<compile_context>
chip_gen: v7x
topology: tpu7x:2x2x1
jax: 0.10.0
libtpu: 0.0.40
codegen_flags: <defaults>
</compile_context>

<pallas_src>
import functools
import math

import jax
import jax.numpy as jnp
from jax import lax
from jax.experimental import pallas as pl
from jax.experimental.pallas import tpu as pltpu


# ------------------------------------------------------------------
# Per-generation VMEM budget (v5e/v6e: 128 MiB physical, v7x: 64 MiB)
# ------------------------------------------------------------------

def _vmem_limit_bytes():
    try:
        info = pltpu.get_tpu_info()
        cap = getattr(info, "vmem_capacity_bytes", None)
        if cap:
            return min(int(cap) * 3 // 4, 100 * 1024 * 1024)
    except Exception:
        pass
    return 48 * 1024 * 1024   # conservative: safe on v7x (64 MiB physical)


_VMEM_LIMIT = _vmem_limit_bytes()

_M_TILES = (1024, 512, 256, 128)
_N_TILES = (1536, 1024, 768, 512, 384, 256, 128)
_K_TILES = (1536, 1024, 768, 512, 384, 256, 128)


def _pick(dim, candidates):
    """Largest candidate tile that evenly divides `dim`, else the full dim."""
    # TODO(synk): ragged dims fall back to one full-dim block; pad M/N/K for
    # large non-divisible shapes instead of relying on this fallback.
    for c in candidates:
        if dim % c == 0:
            return c
    return dim


def _fits_single_pass(tm, k, tn, out_bytes_per_elem, limit):
    """Rough double-buffered working-set estimate for a single-pass-K tile."""
    need = 2 * 2 * (tm * k + k * tn) + 2 * out_bytes_per_elem * tm * tn
    return need <= limit // 2


def _apply_act(y, act):
    if act == "gelu":
        # TODO(synk): HF BERT uses exact erf-GELU; tanh approximation used
        # here (erf lowering on Mosaic not guaranteed).
        return jax.nn.gelu(y, approximate=True)
    if act == "tanh":
        return jnp.tanh(y)
    return y


# ------------------------------------------------------------------
# Dense matmul (bf16 MXU operands, f32 accumulation, fused bias + activation)
# ------------------------------------------------------------------

def _matmul_kernel(x_ref, w_ref, b_ref, o_ref, *, act):
    # single-pass reduction: whole K present, no accumulator scratch
    y = jnp.dot(x_ref[...], w_ref[...], preferred_element_type=jnp.float32)
    y = _apply_act(y + b_ref[...], act)
    o_ref[...] = y.astype(o_ref.dtype)


def _matmul_acc_kernel(x_ref, w_ref, b_ref, o_ref, acc_ref, *, act):
    @pl.when(pl.program_id(2) == 0)
    def _():
        acc_ref[...] = jnp.zeros_like(acc_ref)

    acc_ref[...] += jnp.dot(x_ref[...], w_ref[...],
                            preferred_element_type=jnp.float32)

    @pl.when(pl.program_id(2) == pl.num_programs(2) - 1)
    def _():
        y = _apply_act(acc_ref[...] + b_ref[...], act)
        o_ref[...] = y.astype(o_ref.dtype)


def linear(x, w, b, act=None, out_dtype=jnp.bfloat16):
    M, K = x.shape
    N = w.shape[1]

    x = x.astype(jnp.bfloat16)
    w = w.astype(jnp.bfloat16)          # no-op: weights pre-cast at init
    b = b.astype(jnp.float32).reshape(1, N)

    tn = _pick(N, _N_TILES)
    tm = tk = None
    for c in ([c for c in _M_TILES if M % c == 0] or [M]):
        if _fits_single_pass(c, K, tn, 2, _VMEM_LIMIT):
            tm, tk = c, K
            break

    if tm is not None:                   # single-pass reduction
        return pl.pallas_call(
            functools.partial(_matmul_kernel, act=act),
            out_shape=jax.ShapeDtypeStruct((M, N), out_dtype),
            grid=(M // tm, N // tn),
            in_specs=[pl.BlockSpec((tm, K), lambda i, j: (i, 0)),
                      pl.BlockSpec((K, tn), lambda i, j: (0, j)),
                      pl.BlockSpec((1, tn), lambda i, j: (0, j))],
            out_specs=pl.BlockSpec((tm, tn), lambda i, j: (i, j)),
            compiler_params=pltpu.CompilerParams(
                dimension_semantics=("parallel", "parallel"),
                vmem_limit_bytes=_VMEM_LIMIT),
        )(x, w, b)

    # fallback: tiled reduction with f32 accumulator scratch
    tm = _pick(M, _M_TILES)
    tk = _pick(K, _K_TILES)
    return pl.pallas_call(
        functools.partial(_matmul_acc_kernel, act=act),
        out_shape=jax.ShapeDtypeStruct((M, N), out_dtype),
        grid=(M // tm, N // tn, K // tk),
        in_specs=[pl.BlockSpec((tm, tk), lambda i, j, k: (i, k)),
                  pl.BlockSpec((tk, tn), lambda i, j, k: (k, j)),
                  pl.BlockSpec((1, tn), lambda i, j, k: (0, j))],
        out_specs=pl.BlockSpec((tm, tn), lambda i, j, k: (i, j)),
        scratch_shapes=[pltpu.VMEM((tm, tn), jnp.float32)],
        compiler_params=pltpu.CompilerParams(
            dimension_semantics=("parallel", "parallel", "arbitrary"),
            vmem_limit_bytes=_VMEM_LIMIT),
    )(x, w, b)


# ------------------------------------------------------------------
# Fused matmul + bias + residual + LayerNorm (single-pass K, full-N tile)
# ------------------------------------------------------------------

def _matmul_res_ln_kernel(x_ref, w_ref, b_ref, res_ref, g_ref, beta_ref, o_ref):
    y = jnp.dot(x_ref[...], w_ref[...], preferred_element_type=jnp.float32)
    y = y + b_ref[...] + res_ref[...].astype(jnp.float32)
    mu = jnp.mean(y, axis=-1, keepdims=True)
    var = jnp.maximum(jnp.mean(y * y, axis=-1, keepdims=True) - mu * mu, 0.0)
    yn = (y - mu) * lax.rsqrt(var + 1e-12)       # BERT layer_norm_eps = 1e-12
    o_ref[...] = (yn * g_ref[...] + beta_ref[...]).astype(o_ref.dtype)


def linear_res_ln(x, w, b, res, gamma, beta, out_dtype=jnp.bfloat16):
    """out = LayerNorm(x @ w + b + res); fused when the full-N single-pass tile fits."""
    M, K = x.shape
    N = w.shape[1]

    tm = None
    if _pick(N, _N_TILES) == N:                  # need full hidden dim on lanes
        for c in ([c for c in _M_TILES if M % c == 0] or [M]):
            if _fits_single_pass(c, K, N, 6, _VMEM_LIMIT):
                tm = c
                break
    if tm is None:
        # fall back to separate matmul + (residual + LN) kernels
        return layer_norm(linear(x, w, b), gamma, beta, res=res,
                          out_dtype=out_dtype)

    x = x.astype(jnp.bfloat16)
    w = w.astype(jnp.bfloat16)
    res = res.astype(jnp.bfloat16)
    b = b.astype(jnp.float32).reshape(1, N)
    gamma = gamma.astype(jnp.float32).reshape(1, N)
    beta = beta.astype(jnp.float32).reshape(1, N)

    row_spec = pl.BlockSpec((tm, N), lambda i: (i, 0))
    vec_spec = pl.BlockSpec((1, N), lambda i: (0, 0))
    return pl.pallas_call(
        _matmul_res_ln_kernel,
        out_shape=jax.ShapeDtypeStruct((M, N), out_dtype),
        grid=(M // tm,),
        in_specs=[pl.BlockSpec((tm, K), lambda i: (i, 0)),
                  pl.BlockSpec((K, N), lambda i: (0, 0)),
                  vec_spec,          # bias
                  row_spec,          # residual
                  vec_spec,          # gamma
                  vec_spec],         # beta
        out_specs=row_spec,
        compiler_params=pltpu.CompilerParams(
            dimension_semantics=("parallel",),
            vmem_limit_bytes=_VMEM_LIMIT),
    )(x, w, b, res, gamma, beta)


# ------------------------------------------------------------------
# LayerNorm (optionally fused with residual add), tiled over rows
# ------------------------------------------------------------------

def _ln_kernel(*refs, has_res):
    if has_res:
        x_ref, r_ref, g_ref, b_ref, o_ref = refs
        x = x_ref[...].astype(jnp.float32) + r_ref[...].astype(jnp.float32)
    else:
        x_ref, g_ref, b_ref, o_ref = refs
        x = x_ref[...].astype(jnp.float32)
    mu = jnp.mean(x, axis=-1, keepdims=True)
    var = jnp.maximum(jnp.mean(x * x, axis=-1, keepdims=True) - mu * mu, 0.0)
    y = (x - mu) * lax.rsqrt(var + 1e-12)
    o_ref[...] = (y * g_ref[...] + b_ref[...]).astype(o_ref.dtype)


def layer_norm(x, g, b, res=None, out_dtype=jnp.bfloat16):
    M, H = x.shape
    has_res = res is not None
    n_row_bufs = 3 if has_res else 2
    tm = None
    for c in (2048, 1024, 512, 256, 128):
        if M % c == 0 and 2 * n_row_bufs * c * H * 4 <= _VMEM_LIMIT // 2:
            tm = c
            break
    if tm is None:
        tm = M

    g = g.astype(jnp.float32).reshape(1, H)
    b = b.astype(jnp.float32).reshape(1, H)

    row_spec = pl.BlockSpec((tm, H), lambda i: (i, 0))
    vec_spec = pl.BlockSpec((1, H), lambda i: (0, 0))
    operands = [x] + ([res] if has_res else []) + [g, b]
    in_specs = [row_spec] * (2 if has_res else 1) + [vec_spec, vec_spec]

    return pl.pallas_call(
        functools.partial(_ln_kernel, has_res=has_res),
        out_shape=jax.ShapeDtypeStruct((M, H), out_dtype),
        grid=(M // tm,),
        in_specs=in_specs,
        out_specs=row_spec,
        compiler_params=pltpu.CompilerParams(
            dimension_semantics=("parallel",),
            vmem_limit_bytes=_VMEM_LIMIT),
    )(*operands)


# ------------------------------------------------------------------
# Attention: per-batch grid, fused QKV slab in, lane-dense [S, H] out.
# Per-head results are stored directly into output lane slices (no concat),
# 1/sqrt(Dh) folded into q, softmax normalization applied post-PV on [S, Dh].
# ------------------------------------------------------------------

def _attention_kernel(qkv_ref, m_ref, o_ref, *, num_heads, head_dim, scale):
    # TODO(synk): for long sequences / v7x (64 MiB VMEM) switch to a
    # per-(batch, head) grid with flash-style KV tiling; here the full [S, S]
    # score matrix per head fits VMEM comfortably.
    S = qkv_ref.shape[1]
    qkv = qkv_ref[0]                              # [S, 3H] bf16
    H = num_heads * head_dim
    # hoist additive-mask broadcast once (JAX doesn't CSE broadcast_in_dim)
    mask = jnp.broadcast_to(m_ref[0].astype(jnp.float32), (S, S))
    for h in range(num_heads):
        q = qkv[:, h * head_dim:(h + 1) * head_dim].astype(jnp.float32)
        k = qkv[:, H + h * head_dim:H + (h + 1) * head_dim]
        v = qkv[:, 2 * H + h * head_dim:2 * H + (h + 1) * head_dim]
        # fold scale into the [S, Dh] operand instead of the [S, S] scores
        q = (q * scale).astype(k.dtype)
        s = lax.dot_general(q, k, (((1,), (1,)), ((), ())),
                            preferred_element_type=jnp.float32)     # [S, S]
        s = s + mask
        s = s - jnp.max(s, axis=-1, keepdims=True)
        p = jnp.exp(s)
        denom = jnp.sum(p, axis=-1, keepdims=True)                  # [S, 1]
        ctx = jnp.dot(p.astype(v.dtype), v,
                      preferred_element_type=jnp.float32)           # [S, Dh]
        ctx = ctx * pl.reciprocal(denom, approx=True)               # post-PV
        # per-head store releases live ranges (no big lane concat at the end)
        o_ref[0, :, h * head_dim:(h + 1) * head_dim] = ctx.astype(o_ref.dtype)


def attention(qkv, add_mask, num_heads, head_dim):
    B, S, three_h = qkv.shape
    H = num_heads * head_dim
    scale = 1.0 / math.sqrt(head_dim)
    return pl.pallas_call(
        functools.partial(_attention_kernel, num_heads=num_heads,
                          head_dim=head_dim, scale=scale),
        out_shape=jax.ShapeDtypeStruct((B, S, H), jnp.bfloat16),
        grid=(B,),
        in_specs=[pl.BlockSpec((1, S, three_h), lambda b: (b, 0, 0)),
                  pl.BlockSpec((1, 1, S), lambda b: (b, 0, 0))],
        out_specs=pl.BlockSpec((1, S, H), lambda b: (b, 0, 0)),
        compiler_params=pltpu.CompilerParams(
            dimension_semantics=("parallel",),
            vmem_limit_bytes=_VMEM_LIMIT),
    )(qkv, add_mask)


# ------------------------------------------------------------------
# Normalize + cosine-sim logits + soft-label cross-entropy loss
# ------------------------------------------------------------------

def _loss_kernel(q_ref, d_ref, logits_ref, loss_ref, *, batch):
    def l2norm(x):
        x = x.astype(jnp.float32)
        sq = jnp.sum(x * x, axis=-1, keepdims=True)
        return x * lax.rsqrt(jnp.maximum(sq, 1e-24))   # ~ F.normalize(eps=1e-12)

    qn = l2norm(q_ref[...])                                        # [B, H]
    dn = l2norm(d_ref[...])                                        # [2B, H]
    logits = lax.dot_general(qn, dn, (((1,), (1,)), ((), ())),
                             preferred_element_type=jnp.float32)   # [B, 2B]
    logits_ref[...] = logits

    # CrossEntropyLoss with soft targets [eye(B) | zeros(B,B)], reduction='mean'
    m = jnp.max(logits, axis=-1, keepdims=True)
    lse = jnp.log(jnp.sum(jnp.exp(logits - m), axis=-1, keepdims=True)) + m
    lsm = logits - lse
    rows = lax.broadcasted_iota(jnp.int32, (batch, batch), 0)
    cols = lax.broadcasted_iota(jnp.int32, (batch, batch), 1)
    diag = (rows == cols).astype(jnp.float32)
    loss_ref[0, 0] = -jnp.sum(lsm[:, :batch] * diag) / batch


def similarity_loss(q_emb, p_emb, n_emb):
    B, H = q_emb.shape
    docs = jnp.concatenate([p_emb, n_emb], axis=0).astype(jnp.float32)  # [2B, H]
    logits, loss = pl.pallas_call(
        functools.partial(_loss_kernel, batch=B),
        out_shape=(jax.ShapeDtypeStruct((B, 2 * B), jnp.float32),
                   jax.ShapeDtypeStruct((1, 1), jnp.float32)),
        in_specs=[pl.BlockSpec(memory_space=pltpu.MemorySpace.VMEM)] * 2,
        out_specs=(pl.BlockSpec(memory_space=pltpu.MemorySpace.VMEM),
                   pl.BlockSpec(memory_space=pltpu.MemorySpace.SMEM)),
    )(q_emb.astype(jnp.float32), docs)
    return loss[0, 0], logits


# ------------------------------------------------------------------
# BERT forward (glue in JAX, compute in Pallas kernels)
# ------------------------------------------------------------------

def bert_forward(params, input_ids, attention_mask, cfg):
    B, S = input_ids.shape
    H = cfg["hidden_size"]
    Hn = cfg["num_attention_heads"]
    Dh = H // Hn

    emb = params["emb"]
    # Embedding gathers stay in plain JAX (glue).
    x_emb = (emb["word"][input_ids]
             + emb["pos"][jnp.arange(S)][None, :, :]
             + emb["type"][0][None, None, :])                     # [B, S, H] f32
    x = layer_norm(x_emb.reshape(B * S, H), emb["ln_g"], emb["ln_b"])
    # NOTE: dropout omitted (inference / eval semantics).

    # additive mask, one copy per batch element only ([B, 1, S])
    add_mask = ((1.0 - attention_mask.astype(jnp.float32)) * -1e9).reshape(B, 1, S)

    for layer in params["layers"]:
        # fused QKV projection (weights pre-fused + pre-cast to bf16 at init)
        qkv = linear(x, layer["qkv_w"], layer["qkv_b"])              # [B*S, 3H]
        ctx = attention(qkv.reshape(B, S, 3 * H), add_mask, Hn, Dh)  # [B, S, H]
        # matmul + bias + residual + LayerNorm fused in one kernel
        x1 = linear_res_ln(ctx.reshape(B * S, H), layer["ao_w"], layer["ao_b"],
                           x, layer["ln1_g"], layer["ln1_b"])
        inter = linear(x1, layer["i_w"], layer["i_b"], act="gelu")
        x = linear_res_ln(inter, layer["o_w"], layer["o_b"],
                          x1, layer["ln2_g"], layer["ln2_b"])

    cls = x.reshape(B, S, H)[:, 0, :]                             # [B, H]
    pooled = linear(cls, params["pooler_w"], params["pooler_b"],
                    act="tanh", out_dtype=jnp.float32)
    return pooled


def make_dual_tower_forward(cfg_q, cfg_d):
    @jax.jit
    def fwd(params, query, query_mask, positive, positive_mask,
            negative, negative_mask):
        q_emb = bert_forward(params["query_bert"], query, query_mask, cfg_q)
        p_emb = bert_forward(params["doc_bert"], positive, positive_mask, cfg_d)
        n_emb = bert_forward(params["doc_bert"], negative, negative_mask, cfg_d)
        loss, logits = similarity_loss(q_emb, p_emb, n_emb)
        return loss, logits
    return fwd


# ------------------------------------------------------------------
# Deterministic parameter init (synthetic weights, BERT-shaped)
# Weights are pre-fused (QKV) and pre-cast to bf16 once, here at init time.
# ------------------------------------------------------------------

def init_bert_params(key, cfg):
    H = cfg["hidden_size"]
    I = cfg["intermediate_size"]
    V = cfg["vocab_size"]
    P = cfg["max_position_embeddings"]
    L = cfg["num_hidden_layers"]
    k_emb, k_layers, k_pool = jax.random.split(key, 3)
    kw, kp, kt = jax.random.split(k_emb, 3)

    def nrm(k, shape):
        return 0.02 * jax.random.normal(k, shape, jnp.float32)

    def w_bf16(k, shape):
        return nrm(k, shape).astype(jnp.bfloat16)

    params = {
        "emb": {
            "word": nrm(kw, (V, H)),
            "pos": nrm(kp, (P, H)),
            "type": nrm(kt, (2, H)),
            "ln_g": jnp.ones((H,), jnp.float32),
            "ln_b": jnp.zeros((H,), jnp.float32),
        },
        "layers": [],
        "pooler_w": w_bf16(k_pool, (H, H)),
        "pooler_b": jnp.zeros((H,), jnp.float32),
    }
    for lk in jax.random.split(k_layers, L):
        ks = jax.random.split(lk, 6)
        qkv_w = jnp.concatenate([nrm(ks[0], (H, H)), nrm(ks[1], (H, H)),
                                 nrm(ks[2], (H, H))], axis=1)        # [H, 3H]
        params["layers"].append({
            "qkv_w": qkv_w.astype(jnp.bfloat16),
            "qkv_b": jnp.zeros((3 * H,), jnp.float32),
            "ao_w": w_bf16(ks[3], (H, H)),
            "ao_b": jnp.zeros((H,), jnp.float32),
            "ln1_g": jnp.ones((H,), jnp.float32),
            "ln1_b": jnp.zeros((H,), jnp.float32),
            "i_w": w_bf16(ks[4], (H, I)),
            "i_b": jnp.zeros((I,), jnp.float32),
            "o_w": w_bf16(ks[5], (I, H)),
            "o_b": jnp.zeros((H,), jnp.float32),
            "ln2_g": jnp.ones((H,), jnp.float32),
            "ln2_b": jnp.zeros((H,), jnp.float32),
        })
    return params


# ------------------------------------------------------------------
# Main
# ------------------------------------------------------------------

if __name__ == "__main__":
    B, S = 2, 8
    cfg = dict(vocab_size=100, hidden_size=32, num_hidden_layers=2,
               num_attention_heads=2, intermediate_size=64,
               max_position_embeddings=16)
    cfg_q = dict(cfg)
    cfg_d = dict(cfg)

    root = jax.random.PRNGKey(0)
    k_q, k_d, k_ids = jax.random.split(root, 3)
    params = {
        "query_bert": init_bert_params(k_q, cfg_q),
        "doc_bert": init_bert_params(k_d, cfg_d),
    }

    k1, k2, k3 = jax.random.split(k_ids, 3)
    query = jax.random.randint(k1, (B, S), 0, cfg["vocab_size"], dtype=jnp.int32)
    positive = jax.random.randint(k2, (B, S), 0, cfg["vocab_size"], dtype=jnp.int32)
    negative = jax.random.randint(k3, (B, S), 0, cfg["vocab_size"], dtype=jnp.int32)
    # simple masks: last position of each doc sequence is padding
    query_mask = jnp.ones((B, S), jnp.int32)
    positive_mask = jnp.ones((B, S), jnp.int32).at[:, -1].set(0)
    negative_mask = jnp.ones((B, S), jnp.int32).at[:, -1].set(0)

    fwd = make_dual_tower_forward(cfg_q, cfg_d)
    loss, logits = fwd(params, query, query_mask,
                       positive, positive_mask,
                       negative, negative_mask)
    jax.block_until_ready((loss, logits))
    assert logits.shape == (B, 2 * B)
    assert jnp.isfinite(loss)
    print("KERNEL_OK")
</pallas_src>

<mosaic_0001>
module attributes {stable_mosaic.version = 11 : i64} {
  func.func @_matmul_kernel(%arg0: i32, %arg1: i32, %arg2: memref<16x32xbf16, #tpu.memory_space<vmem>>, %arg3: memref<32x96xbf16, #tpu.memory_space<vmem>>, %arg4: memref<1x96xf32, #tpu.memory_space<vmem>>, %arg5: memref<16x96xbf16, #tpu.memory_space<vmem>>) attributes {dimension_semantics = [#tpu.dimension_semantics<parallel>, #tpu.dimension_semantics<parallel>], iteration_bounds = array<i64: 1, 1>, scalar_prefetch = 0 : i64, scratch_operands = 0 : i64, tpu.core_type = #tpu.core_type<tc>, window_params = [{transform_indices = @transform_0, window_bounds = array<i64: 16, 32>}, {transform_indices = @transform_1, window_bounds = array<i64: 32, 96>}, {transform_indices = @transform_2, window_bounds = array<i64: 1, 96>}, {transform_indices = @transform_3, window_bounds = array<i64: 16, 96>}]} {
    %c0 = arith.constant 0 : index
    %c0_0 = arith.constant 0 : index
    %0 = vector.load %arg2[%c0, %c0_0] : memref<16x32xbf16, #tpu.memory_space<vmem>>, vector<16x32xbf16>
    %c0_1 = arith.constant 0 : index
    %c0_2 = arith.constant 0 : index
    %1 = vector.load %arg3[%c0_1, %c0_2] : memref<32x96xbf16, #tpu.memory_space<vmem>>, vector<32x96xbf16>
    %cst = arith.constant dense<0.000000e+00> : vector<16x96xf32>
    %2 = tpu.matmul %0, %1, %cst {dimension_numbers = #tpu.dot_dimension_numbers<[1], [0], [0], [1], [0, 0, 1, 1], [], []>} : vector<16x32xbf16>, vector<32x96xbf16>, vector<16x96xf32> -> vector<16x96xf32>
    %c0_3 = arith.constant 0 : index
    %c0_4 = arith.constant 0 : index
    %3 = vector.load %arg4[%c0_3, %c0_4] : memref<1x96xf32, #tpu.memory_space<vmem>>, vector<1x96xf32>
    %4 = vector.broadcast %3 : vector<1x96xf32> to vector<16x96xf32>
    %5 = arith.addf %2, %4 : vector<16x96xf32>
    %6 = arith.truncf %5 : vector<16x96xf32> to vector<16x96xbf16>
    %c0_5 = arith.constant 0 : index
    %c0_6 = arith.constant 0 : index
    %7 = vector.load %arg5[%c0_5, %c0_6] : memref<16x96xbf16, #tpu.memory_space<vmem>>, vector<16x96xbf16>
    tpu.vector_store %arg5[%c0_5, %c0_6], %6 {strides = array<i32>} : memref<16x96xbf16, #tpu.memory_space<vmem>>, vector<16x96xbf16>,
    return
  }
  func.func @transform_0(%arg0: i32, %arg1: i32) -> (i32, i32) {
    %c0_i32 = arith.constant 0 : i32
    %c0_i32_0 = arith.constant 0 : i32
    return %arg0, %c0_i32 : i32, i32
  }
  func.func @transform_1(%arg0: i32, %arg1: i32) -> (i32, i32) {
    %c0_i32 = arith.constant 0 : i32
    %c0_i32_0 = arith.constant 0 : i32
    return %c0_i32, %arg1 : i32, i32
  }
  func.func @transform_2(%arg0: i32, %arg1: i32) -> (i32, i32) {
    %c0_i32 = arith.constant 0 : i32
    %c0_i32_0 = arith.constant 0 : i32
    return %c0_i32, %arg1 : i32, i32
  }
  func.func @transform_3(%arg0: i32, %arg1: i32) -> (i32, i32) {
    %c0_i32 = arith.constant 0 : i32
    return %arg0, %arg1 : i32, i32
  }
}

module attributes {stable_mosaic.version = 11 : i64} {
  func.func @_attention_kernel(%arg0: i32, %arg1: memref<1x8x96xbf16, #tpu.memory_space<vmem>>, %arg2: memref<1x1x8xf32, #tpu.memory_space<vmem>>, %arg3: memref<1x8x32xbf16, #tpu.memory_space<vmem>>) attributes {dimension_semantics = [#tpu.dimension_semantics<parallel>], iteration_bounds = array<i64: 2>, scalar_prefetch = 0 : i64, scratch_operands = 0 : i64, tpu.core_type = #tpu.core_type<tc>, window_params = [{transform_indices = @transform_0, window_bounds = array<i64: 1, 8, 96>}, {transform_indices = @transform_1, window_bounds = array<i64: 1, 1, 8>}, {transform_indices = @transform_2, window_bounds = array<i64: 1, 8, 32>}]} {
    %c0 = arith.constant 0 : index
    %c0_0 = arith.constant 0 : index
    %c0_1 = arith.constant 0 : index
    %0 = vector.load %arg1[%c0, %c0_0, %c0_1] : memref<1x8x96xbf16, #tpu.memory_space<vmem>>, vector<1x8x96xbf16>
    %1 = vector.shape_cast %0 : vector<1x8x96xbf16> to vector<8x96xbf16>
    %c0_2 = arith.constant 0 : index
    %c0_3 = arith.constant 0 : index
    %c0_4 = arith.constant 0 : index
    %2 = vector.load %arg2[%c0_2, %c0_3, %c0_4] : memref<1x1x8xf32, #tpu.memory_space<vmem>>, vector<1x1x8xf32>
    %3 = vector.shape_cast %2 : vector<1x1x8xf32> to vector<1x8xf32>
    %4 = vector.shape_cast %3 : vector<1x8xf32> to vector<1x8xf32>
    %5 = vector.broadcast %4 : vector<1x8xf32> to vector<8x8xf32>
    %6 = vector.extract_strided_slice %1 {offsets = [0, 0], sizes = [8, 16], strides = [1, 1]} : vector<8x96xbf16> to vector<8x16xbf16>
    %7 = arith.extf %6 : vector<8x16xbf16> to vector<8x16xf32>
    %8 = vector.extract_strided_slice %1 {offsets = [0, 32], sizes = [8, 16], strides = [1, 1]} : vector<8x96xbf16> to vector<8x16xbf16>
    %9 = vector.extract_strided_slice %1 {offsets = [0, 64], sizes = [8, 16], strides = [1, 1]} : vector<8x96xbf16> to vector<8x16xbf16>
    %cst = arith.constant 2.500000e-01 : f32
    %10 = vector.broadcast %cst : f32 to vector<8x16xf32>
    %11 = arith.mulf %7, %10 : vector<8x16xf32>
    %12 = arith.truncf %11 : vector<8x16xf32> to vector<8x16xbf16>
    %cst_5 = arith.constant dense<0.000000e+00> : vector<8x8xf32>
    %13 = tpu.matmul %12, %8, %cst_5 {dimension_numbers = #tpu.dot_dimension_numbers<[1], [1], [0], [0], [0, 0, 1, 0], [], []>} : vector<8x16xbf16>, vector<8x16xbf16>, vector<8x8xf32> -> vector<8x8xf32>
    %14 = arith.addf %13, %5 : vector<8x8xf32>
    %cst_6 = arith.constant dense<0xFF800000> : vector<8xf32>
    %15 = vector.multi_reduction <maximumf>, %14, %cst_6 [1] : vector<8x8xf32> to vector<8xf32>
    %16 = vector.shape_cast %15 : vector<8xf32> to vector<8x1xf32>
    %17 = vector.broadcast %16 : vector<8x1xf32> to vector<8x8xf32>
    %18 = arith.subf %14, %17 : vector<8x8xf32>
    %19 = math.exp %18 : vector<8x8xf32>
    %cst_7 = arith.constant dense<0.000000e+00> : vector<8xf32>
    %20 = vector.multi_reduction <add>, %19, %cst_7 [1] : vector<8x8xf32> to vector<8xf32>
    %21 = vector.shape_cast %20 : vector<8xf32> to vector<8x1xf32>
    %22 = arith.truncf %19 : vector<8x8xf32> to vector<8x8xbf16>
    %cst_8 = arith.constant dense<0.000000e+00> : vector<8x16xf32>
    %23 = tpu.matmul %22, %9, %cst_8 {dimension_numbers = #tpu.dot_dimension_numbers<[1], [0], [0], [1], [0, 0, 1, 1], [], []>} : vector<8x8xbf16>, vector<8x16xbf16>, vector<8x16xf32> -> vector<8x16xf32>
    %24 = tpu.reciprocal %21 {approx = true} : vector<8x1xf32> -> vector<8x1xf32>
    %25 = vector.broadcast %24 : vector<8x1xf32> to vector<8x16xf32>
    %26 = arith.mulf %23, %25 : vector<8x16xf32>
    %27 = arith.truncf %26 : vector<8x16xf32> to vector<8x16xbf16>
    %c0_9 = arith.constant 0 : index
    %c0_10 = arith.constant 0 : index
    %c0_11 = arith.constant 0 : index
    %28 = vector.load %arg3[%c0_9, %c0_10, %c0_11] : memref<1x8x32xbf16, #tpu.memory_space<vmem>>, vector<1x8x16xbf16>
    %29 = vector.shape_cast %28 : vector<1x8x16xbf16> to vector<8x16xbf16>
    %30 = vector.shape_cast %27 : vector<8x16xbf16> to vector<1x8x16xbf16>
    tpu.vector_store %arg3[%c0_9, %c0_10, %c0_11], %30 {strides = array<i32>} : memref<1x8x32xbf16, #tpu.memory_space<vmem>>, vector<1x8x16xbf16>,
    %31 = vector.extract_strided_slice %1 {offsets = [0, 16], sizes = [8, 16], strides = [1, 1]} : vector<8x96xbf16> to vector<8x16xbf16>
    %32 = arith.extf %31 : vector<8x16xbf16> to vector<8x16xf32>
    %33 = vector.extract_strided_slice %1 {offsets = [0, 48], sizes = [8, 16], strides = [1, 1]} : vector<8x96xbf16> to vector<8x16xbf16>
    %34 = vector.extract_strided_slice %1 {offsets = [0, 80], sizes = [8, 16], strides = [1, 1]} : vector<8x96xbf16> to vector<8x16xbf16>
    %cst_12 = arith.constant 2.500000e-01 : f32
    %35 = vector.broadcast %cst_12 : f32 to vector<8x16xf32>
    %36 = arith.mulf %32, %35 : vector<8x16xf32>
    %37 = arith.truncf %36 : vector<8x16xf32> to vector<8x16xbf16>
    %cst_13 = arith.constant dense<0.000000e+00> : vector<8x8xf32>
    %38 = tpu.matmul %37, %33, %cst_13 {dimension_numbers = #tpu.dot_dimension_numbers<[1], [1], [0], [0], [0, 0, 1, 0], [], []>} : vector<8x16xbf16>, vector<8x16xbf16>, vector<8x8xf32> -> vector<8x8xf32>
    %39 = arith.addf %38, %5 : vector<8x8xf32>
    %cst_14 = arith.constant dense<0xFF800000> : vector<8xf32>
    %40 = vector.multi_reduction <maximumf>, %39, %cst_14 [1] : vector<8x8xf32> to vector<8xf32>
    %41 = vector.shape_cast %40 : vector<8xf32> to vector<8x1xf32>
    %42 = vector.broadcast %41 : vector<8x1xf32> to vector<8x8xf32>
    %43 = arith.subf %39, %42 : vector<8x8xf32>
    %44 = math.exp %43 : vector<8x8xf32>
    %cst_15 = arith.constant dense<0.000000e+00> : vector<8xf32>
    %45 = vector.multi_reduction <add>, %44, %cst_15 [1] : vector<8x8xf32> to vector<8xf32>
    %46 = vector.shape_cast %45 : vector<8xf32> to vector<8x1xf32>
    %47 = arith.truncf %44 : vector<8x8xf32> to vector<8x8xbf16>
    %cst_16 = arith.constant dense<0.000000e+00> : vector<8x16xf32>
    %48 = tpu.matmul %47, %34, %cst_16 {dimension_numbers = #tpu.dot_dimension_numbers<[1], [0], [0], [1], [0, 0, 1, 1], [], []>} : vector<8x8xbf16>, vector<8x16xbf16>, vector<8x16xf32> -> vector<8x16xf32>
    %49 = tpu.reciprocal %46 {approx = true} : vector<8x1xf32> -> vector<8x1xf32>
    %50 = vector.broadcast %49 : vector<8x1xf32> to vector<8x16xf32>
    %51 = arith.mulf %48, %50 : vector<8x16xf32>
    %52 = arith.truncf %51 : vector<8x16xf32> to vector<8x16xbf16>
    %c0_17 = arith.constant 0 : index
    %c0_18 = arith.constant 0 : index
    %c16 = arith.constant 16 : index
    %53 = vector.load %arg3[%c0_17, %c0_18, %c16] : memref<1x8x32xbf16, #tpu.memory_space<vmem>>, vector<1x8x16xbf16>
    %54 = vector.shape_cast %53 : vector<1x8x16xbf16> to vector<8x16xbf16>
    %55 = vector.shape_cast %52 : vector<8x16xbf16> to vector<1x8x16xbf16>
    tpu.vector_store %arg3[%c0_17, %c0_18, %c16], %55 {strides = array<i32>} : memref<1x8x32xbf16, #tpu.memory_space<vmem>>, vector<1x8x16xbf16>,
    return
  }
  func.func @transform_0(%arg0: i32) -> (i32, i32, i32) {
    %c0_i32 = arith.constant 0 : i32
    %c0_i32_0 = arith.constant 0 : i32
    %c0_i32_1 = arith.constant 0 : i32
    return %arg0, %c0_i32, %c0_i32_0 : i32, i32, i32
  }
  func.func @transform_1(%arg0: i32) -> (i32, i32, i32) {
    %c0_i32 = arith.constant 0 : i32
    %c0_i32_0 = arith.constant 0 : i32
    %c0_i32_1 = arith.constant 0 : i32
    return %arg0, %c0_i32, %c0_i32_0 : i32, i32, i32
  }
  func.func @transform_2(%arg0: i32) -> (i32, i32, i32) {
    %c0_i32 = arith.constant 0 : i32
    %c0_i32_0 = arith.constant 0 : i32
    %c0_i32_1 = arith.constant 0 : i32
    return %arg0, %c0_i32, %c0_i32_0 : i32, i32, i32
  }
}

module attributes {stable_mosaic.version = 11 : i64} {
  func.func @_ln_kernel(%arg0: i32, %arg1: memref<16x32xf32, #tpu.memory_space<vmem>>, %arg2: memref<1x32xf32, #tpu.memory_space<vmem>>, %arg3: memref<1x32xf32, #tpu.memory_space<vmem>>, %arg4: memref<16x32xbf16, #tpu.memory_space<vmem>>) attributes {dimension_semantics = [#tpu.dimension_semantics<parallel>], iteration_bounds = array<i64: 1>, scalar_prefetch = 0 : i64, scratch_operands = 0 : i64, tpu.core_type = #tpu.core_type<tc>, window_params = [{transform_indices = @transform_0, window_bounds = array<i64: 16, 32>}, {pipeline_mode = #tpu.pipeline_mode<synchronous>, transform_indices = @transform_1, window_bounds = array<i64: 1, 32>}, {pipeline_mode = #tpu.pipeline_mode<synchronous>, transform_indices = @transform_2, window_bounds = array<i64: 1, 32>}, {transform_indices = @transform_3, window_bounds = array<i64: 16, 32>}]} {
    %c0 = arith.constant 0 : index
    %c0_0 = arith.constant 0 : index
    %0 = vector.load %arg1[%c0, %c0_0] : memref<16x32xf32, #tpu.memory_space<vmem>>, vector<16x32xf32>
    %cst = arith.constant dense<0.000000e+00> : vector<16xf32>
    %1 = vector.multi_reduction <add>, %0, %cst [1] : vector<16x32xf32> to vector<16xf32>
    %2 = vector.shape_cast %1 : vector<16xf32> to vector<16x1xf32>
    %cst_1 = arith.constant 3.200000e+01 : f32
    %3 = vector.broadcast %cst_1 : f32 to vector<16x1xf32>
    %4 = arith.divf %2, %3 : vector<16x1xf32>
    %5 = arith.mulf %0, %0 : vector<16x32xf32>
    %cst_2 = arith.constant dense<0.000000e+00> : vector<16xf32>
    %6 = vector.multi_reduction <add>, %5, %cst_2 [1] : vector<16x32xf32> to vector<16xf32>
    %7 = vector.shape_cast %6 : vector<16xf32> to vector<16x1xf32>
    %cst_3 = arith.constant 3.200000e+01 : f32
    %8 = vector.broadcast %cst_3 : f32 to vector<16x1xf32>
    %9 = arith.divf %7, %8 : vector<16x1xf32>
    %10 = arith.mulf %4, %4 : vector<16x1xf32>
    %11 = arith.subf %9, %10 : vector<16x1xf32>
    %cst_4 = arith.constant 0.000000e+00 : f32
    %12 = vector.broadcast %cst_4 : f32 to vector<16x1xf32>
    %13 = arith.maximumf %11, %12 : vector<16x1xf32>
    %14 = vector.broadcast %4 : vector<16x1xf32> to vector<16x32xf32>
    %15 = arith.subf %0, %14 : vector<16x32xf32>
    %cst_5 = arith.constant 9.99999996E-13 : f32
    %16 = vector.broadcast %cst_5 : f32 to vector<16x1xf32>
    %17 = arith.addf %13, %16 : vector<16x1xf32>
    %18 = math.rsqrt %17 : vector<16x1xf32>
    %19 = vector.broadcast %18 : vector<16x1xf32> to vector<16x32xf32>
    %20 = arith.mulf %15, %19 : vector<16x32xf32>
    %c0_6 = arith.constant 0 : index
    %c0_7 = arith.constant 0 : index
    %21 = vector.load %arg2[%c0_6, %c0_7] : memref<1x32xf32, #tpu.memory_space<vmem>>, vector<1x32xf32>
    %22 = vector.broadcast %21 : vector<1x32xf32> to vector<16x32xf32>
    %23 = arith.mulf %20, %22 : vector<16x32xf32>
    %c0_8 = arith.constant 0 : index
    %c0_9 = arith.constant 0 : index
    %24 = vector.load %arg3[%c0_8, %c0_9] : memref<1x32xf32, #tpu.memory_space<vmem>>, vector<1x32xf32>
    %25 = vector.broadcast %24 : vector<1x32xf32> to vector<16x32xf32>
    %26 = arith.addf %23, %25 : vector<16x32xf32>
    %27 = arith.truncf %26 : vector<16x32xf32> to vector<16x32xbf16>
    %c0_10 = arith.constant 0 : index
    %c0_11 = arith.constant 0 : index
    %28 = vector.load %arg4[%c0_10, %c0_11] : memref<16x32xbf16, #tpu.memory_space<vmem>>, vector<16x32xbf16>
    tpu.vector_store %arg4[%c0_10, %c0_11], %27 {strides = array<i32>} : memref<16x32xbf16, #tpu.memory_space<vmem>>, vector<16x32xbf16>,
    return
  }
  func.func @transform_0(%arg0: i32) -> (i32, i32) {
    %c0_i32 = arith.constant 0 : i32
    %c0_i32_0 = arith.constant 0 : i32
    return %arg0, %c0_i32 : i32, i32
  }
  func.func @transform_1(%arg0: i32) -> (i32, i32) {
    %c0_i32 = arith.constant 0 : i32
    %c0_i32_0 = arith.constant 0 : i32
    %c0_i32_1 = arith.constant 0 : i32
    return %c0_i32, %c0_i32_0 : i32, i32
  }
  func.func @transform_2(%arg0: i32) -> (i32, i32) {
    %c0_i32 = arith.constant 0 : i32
    %c0_i32_0 = arith.constant 0 : i32
    %c0_i32_1 = arith.constant 0 : i32
    return %c0_i32, %c0_i32_0 : i32, i32
  }
  func.func @transform_3(%arg0: i32) -> (i32, i32) {
    %c0_i32 = arith.constant 0 : i32
    %c0_i32_0 = arith.constant 0 : i32
    return %arg0, %c0_i32 : i32, i32
  }
}

module attributes {stable_mosaic.version = 11 : i64} {
  func.func @_matmul_res_ln_kernel(%arg0: i32, %arg1: memref<16x32xbf16, #tpu.memory_space<vmem>>, %arg2: memref<32x32xbf16, #tpu.memory_space<vmem>>, %arg3: memref<1x32xf32, #tpu.memory_space<vmem>>, %arg4: memref<16x32xbf16, #tpu.memory_space<vmem>>, %arg5: memref<1x32xf32, #tpu.memory_space<vmem>>, %arg6: memref<1x32xf32, #tpu.memory_space<vmem>>, %arg7: memref<16x32xbf16, #tpu.memory_space<vmem>>) attributes {dimension_semantics = [#tpu.dimension_semantics<parallel>], iteration_bounds = array<i64: 1>, scalar_prefetch = 0 : i64, scratch_operands = 0 : i64, tpu.core_type = #tpu.core_type<tc>, window_params = [{transform_indices = @transform_0, window_bounds = array<i64: 16, 32>}, {pipeline_mode = #tpu.pipeline_mode<synchronous>, transform_indices = @transform_1, window_bounds = array<i64: 32, 32>}, {pipeline_mode = #tpu.pipeline_mode<synchronous>, transform_indices = @transform_2, window_bounds = array<i64: 1, 32>}, {transform_indices = @transform_3, window_bounds = array<i64: 16, 32>}, {pipeline_mode = #tpu.pipeline_mode<synchronous>, transform_indices = @transform_4, window_bounds = array<i64: 1, 32>}, {pipeline_mode = #tpu.pipeline_mode<synchronous>, transform_indices = @transform_5, window_bounds = array<i64: 1, 32>}, {transform_indices = @transform_6, window_bounds = array<i64: 16, 32>}]} {
    %c0 = arith.constant 0 : index
    %c0_0 = arith.constant 0 : index
    %0 = vector.load %arg1[%c0, %c0_0] : memref<16x32xbf16, #tpu.memory_space<vmem>>, vector<16x32xbf16>
    %c0_1 = arith.constant 0 : index
    %c0_2 = arith.constant 0 : index
    %1 = vector.load %arg2[%c0_1, %c0_2] : memref<32x32xbf16, #tpu.memory_space<vmem>>, vector<32x32xbf16>
    %cst = arith.constant dense<0.000000e+00> : vector<16x32xf32>
    %2 = tpu.matmul %0, %1, %cst {dimension_numbers = #tpu.dot_dimension_numbers<[1], [0], [0], [1], [0, 0, 1, 1], [], []>} : vector<16x32xbf16>, vector<32x32xbf16>, vector<16x32xf32> -> vector<16x32xf32>
    %c0_3 = arith.constant 0 : index
    %c0_4 = arith.constant 0 : index
    %3 = vector.load %arg3[%c0_3, %c0_4] : memref<1x32xf32, #tpu.memory_space<vmem>>, vector<1x32xf32>
    %4 = vector.broadcast %3 : vector<1x32xf32> to vector<16x32xf32>
    %5 = arith.addf %2, %4 : vector<16x32xf32>
    %c0_5 = arith.constant 0 : index
    %c0_6 = arith.constant 0 : index
    %6 = vector.load %arg4[%c0_5, %c0_6] : memref<16x32xbf16, #tpu.memory_space<vmem>>, vector<16x32xbf16>
    %7 = arith.extf %6 : vector<16x32xbf16> to vector<16x32xf32>
    %8 = arith.addf %5, %7 : vector<16x32xf32>
    %cst_7 = arith.constant dense<0.000000e+00> : vector<16xf32>
    %9 = vector.multi_reduction <add>, %8, %cst_7 [1] : vector<16x32xf32> to vector<16xf32>
    %10 = vector.shape_cast %9 : vector<16xf32> to vector<16x1xf32>
    %cst_8 = arith.constant 3.200000e+01 : f32
    %11 = vector.broadcast %cst_8 : f32 to vector<16x1xf32>
    %12 = arith.divf %10, %11 : vector<16x1xf32>
    %13 = arith.mulf %8, %8 : vector<16x32xf32>
    %cst_9 = arith.constant dense<0.000000e+00> : vector<16xf32>
    %14 = vector.multi_reduction <add>, %13, %cst_9 [1] : vector<16x32xf32> to vector<16xf32>
    %15 = vector.shape_cast %14 : vector<16xf32> to vector<16x1xf32>
    %cst_10 = arith.constant 3.200000e+01 : f32
    %16 = vector.broadcast %cst_10 : f32 to vector<16x1xf32>
    %17 = arith.divf %15, %16 : vector<16x1xf32>
    %18 = arith.mulf %12, %12 : vector<16x1xf32>
    %19 = arith.subf %17, %18 : vector<16x1xf32>
    %cst_11 = arith.constant 0.000000e+00 : f32
    %20 = vector.broadcast %cst_11 : f32 to vector<16x1xf32>
    %21 = arith.maximumf %19, %20 : vector<16x1xf32>
    %22 = vector.broadcast %12 : vector<16x1xf32> to vector<16x32xf32>
    %23 = arith.subf %8, %22 : vector<16x32xf32>
    %cst_12 = arith.constant 9.99999996E-13 : f32
    %24 = vector.broadcast %cst_12 : f32 to vector<16x1xf32>
    %25 = arith.addf %21, %24 : vector<16x1xf32>
    %26 = math.rsqrt %25 : vector<16x1xf32>
    %27 = vector.broadcast %26 : vector<16x1xf32> to vector<16x32xf32>
    %28 = arith.mulf %23, %27 : vector<16x32xf32>
    %c0_13 = arith.constant 0 : index
    %c0_14 = arith.constant 0 : index
    %29 = vector.load %arg5[%c0_13, %c0_14] : memref<1x32xf32, #tpu.memory_space<vmem>>, vector<1x32xf32>
    %30 = vector.broadcast %29 : vector<1x32xf32> to vector<16x32xf32>
    %31 = arith.mulf %28, %30 : vector<16x32xf32>
    %c0_15 = arith.constant 0 : index
    %c0_16 = arith.constant 0 : index
    %32 = vector.load %arg6[%c0_15, %c0_16] : memref<1x32xf32, #tpu.memory_space<vmem>>, vector<1x32xf32>
    %33 = vector.broadcast %32 : vector<1x32xf32> to vector<16x32xf32>
    %34 = arith.addf %31, %33 : vector<16x32xf32>
    %35 = arith.truncf %34 : vector<16x32xf32> to vector<16x32xbf16>
    %c0_17 = arith.constant 0 : index
    %c0_18 = arith.constant 0 : index
    %36 = vector.load %arg7[%c0_17, %c0_18] : memref<16x32xbf16, #tpu.memory_space<vmem>>, vector<16x32xbf16>
    tpu.vector_store %arg7[%c0_17, %c0_18], %35 {strides = array<i32>} : memref<16x32xbf16, #tpu.memory_space<vmem>>, vector<16x32xbf16>,
    return
  }
  func.func @transform_0(%arg0: i32) -> (i32, i32) {
    %c0_i32 = arith.constant 0 : i32
    %c0_i32_0 = arith.constant 0 : i32
    return %arg0, %c0_i32 : i32, i32
  }
  func.func @transform_1(%arg0: i32) -> (i32, i32) {
    %c0_i32 = arith.constant 0 : i32
    %c0_i32_0 = arith.constant 0 : i32
    %c0_i32_1 = arith.constant 0 : i32
    return %c0_i32, %c0_i32_0 : i32, i32
  }
  func.func @transform_2(%arg0: i32) -> (i32, i32) {
    %c0_i32 = arith.constant 0 : i32
    %c0_i32_0 = arith.constant 0 : i32
    %c0_i32_1 = arith.constant 0 : i32
    return %c0_i32, %c0_i32_0 : i32, i32
  }
  func.func @transform_3(%arg0: i32) -> (i32, i32) {
    %c0_i32 = arith.constant 0 : i32
    %c0_i32_0 = arith.constant 0 : i32
    return %arg0, %c0_i32 : i32, i32
  }
  func.func @transform_4(%arg0: i32) -> (i32, i32) {
    %c0_i32 = arith.constant 0 : i32
    %c0_i32_0 = arith.constant 0 : i32
    %c0_i32_1 = arith.constant 0 : i32
    return %c0_i32, %c0_i32_0 : i32, i32
  }
  func.func @transform_5(%arg0: i32) -> (i32, i32) {
    %c0_i32 = arith.constant 0 : i32
    %c0_i32_0 = arith.constant 0 : i32
    %c0_i32_1 = arith.constant 0 : i32
    return %c0_i32, %c0_i32_0 : i32, i32
  }
  func.func @transform_6(%arg0: i32) -> (i32, i32) {
    %c0_i32 = arith.constant 0 : i32
    %c0_i32_0 = arith.constant 0 : i32
    return %arg0, %c0_i32 : i32, i32
  }
}

module attributes {stable_mosaic.version = 11 : i64} {
  func.func @_matmul_kernel(%arg0: i32, %arg1: i32, %arg2: memref<16x32xbf16, #tpu.memory_space<vmem>>, %arg3: memref<32x64xbf16, #tpu.memory_space<vmem>>, %arg4: memref<1x64xf32, #tpu.memory_space<vmem>>, %arg5: memref<16x64xbf16, #tpu.memory_space<vmem>>) attributes {dimension_semantics = [#tpu.dimension_semantics<parallel>, #tpu.dimension_semantics<parallel>], iteration_bounds = array<i64: 1, 1>, scalar_prefetch = 0 : i64, scratch_operands = 0 : i64, tpu.core_type = #tpu.core_type<tc>, window_params = [{transform_indices = @transform_0, window_bounds = array<i64: 16, 32>}, {transform_indices = @transform_1, window_bounds = array<i64: 32, 64>}, {transform_indices = @transform_2, window_bounds = array<i64: 1, 64>}, {transform_indices = @transform_3, window_bounds = array<i64: 16, 64>}]} {
    %c0 = arith.constant 0 : index
    %c0_0 = arith.constant 0 : index
    %0 = vector.load %arg2[%c0, %c0_0] : memref<16x32xbf16, #tpu.memory_space<vmem>>, vector<16x32xbf16>
    %c0_1 = arith.constant 0 : index
    %c0_2 = arith.constant 0 : index
    %1 = vector.load %arg3[%c0_1, %c0_2] : memref<32x64xbf16, #tpu.memory_space<vmem>>, vector<32x64xbf16>
    %cst = arith.constant dense<0.000000e+00> : vector<16x64xf32>
    %2 = tpu.matmul %0, %1, %cst {dimension_numbers = #tpu.dot_dimension_numbers<[1], [0], [0], [1], [0, 0, 1, 1], [], []>} : vector<16x32xbf16>, vector<32x64xbf16>, vector<16x64xf32> -> vector<16x64xf32>
    %c0_3 = arith.constant 0 : index
    %c0_4 = arith.constant 0 : index
    %3 = vector.load %arg4[%c0_3, %c0_4] : memref<1x64xf32, #tpu.memory_space<vmem>>, vector<1x64xf32>
    %4 = vector.broadcast %3 : vector<1x64xf32> to vector<16x64xf32>
    %5 = arith.addf %2, %4 : vector<16x64xf32>
    %6 = arith.mulf %5, %5 : vector<16x64xf32>
    %7 = arith.mulf %5, %6 : vector<16x64xf32>
    %cst_5 = arith.constant 4.471500e-02 : f32
    %8 = vector.broadcast %cst_5 : f32 to vector<16x64xf32>
    %9 = arith.mulf %8, %7 : vector<16x64xf32>
    %10 = arith.addf %5, %9 : vector<16x64xf32>
    %cst_6 = arith.constant 0.797884583 : f32
    %11 = vector.broadcast %cst_6 : f32 to vector<16x64xf32>
    %12 = arith.mulf %11, %10 : vector<16x64xf32>
    %13 = math.tanh %12 : vector<16x64xf32>
    %cst_7 = arith.constant 1.000000e+00 : f32
    %14 = vector.broadcast %cst_7 : f32 to vector<16x64xf32>
    %15 = arith.addf %14, %13 : vector<16x64xf32>
    %cst_8 = arith.constant 5.000000e-01 : f32
    %16 = vector.broadcast %cst_8 : f32 to vector<16x64xf32>
    %17 = arith.mulf %16, %15 : vector<16x64xf32>
    %18 = arith.mulf %5, %17 : vector<16x64xf32>
    %19 = arith.truncf %18 : vector<16x64xf32> to vector<16x64xbf16>
    %c0_9 = arith.constant 0 : index
    %c0_10 = arith.constant 0 : index
    %20 = vector.load %arg5[%c0_9, %c0_10] : memref<16x64xbf16, #tpu.memory_space<vmem>>, vector<16x64xbf16>
    tpu.vector_store %arg5[%c0_9, %c0_10], %19 {strides = array<i32>} : memref<16x64xbf16, #tpu.memory_space<vmem>>, vector<16x64xbf16>,
    return
  }
  func.func @transform_0(%arg0: i32, %arg1: i32) -> (i32, i32) {
    %c0_i32 = arith.constant 0 : i32
    %c0_i32_0 = arith.constant 0 : i32
    return %arg0, %c0_i32 : i32, i32
  }
  func.func @transform_1(%arg0: i32, %arg1: i32) -> (i32, i32) {
    %c0_i32 = arith.constant 0 : i32
    %c0_i32_0 = arith.constant 0 : i32
    return %c0_i32, %arg1 : i32, i32
  }
  func.func @transform_2(%arg0: i32, %arg1: i32) -> (i32, i32) {
    %c0_i32 = arith.constant 0 : i32
    %c0_i32_0 = arith.constant 0 : i32
    return %c0_i32, %arg1 : i32, i32
  }
  func.func @transform_3(%arg0: i32, %arg1: i32) -> (i32, i32) {
    %c0_i32 = arith.constant 0 : i32
    return %arg0, %arg1 : i32, i32
  }
}

module attributes {stable_mosaic.version = 11 : i64} {
  func.func @_matmul_res_ln_kernel(%arg0: i32, %arg1: memref<16x64xbf16, #tpu.memory_space<vmem>>, %arg2: memref<64x32xbf16, #tpu.memory_space<vmem>>, %arg3: memref<1x32xf32, #tpu.memory_space<vmem>>, %arg4: memref<16x32xbf16, #tpu.memory_space<vmem>>, %arg5: memref<1x32xf32, #tpu.memory_space<vmem>>, %arg6: memref<1x32xf32, #tpu.memory_space<vmem>>, %arg7: memref<16x32xbf16, #tpu.memory_space<vmem>>) attributes {dimension_semantics = [#tpu.dimension_semantics<parallel>], iteration_bounds = array<i64: 1>, scalar_prefetch = 0 : i64, scratch_operands = 0 : i64, tpu.core_type = #tpu.core_type<tc>, window_params = [{transform_indices = @transform_0, window_bounds = array<i64: 16, 64>}, {pipeline_mode = #tpu.pipeline_mode<synchronous>, transform_indices = @transform_1, window_bounds = array<i64: 64, 32>}, {pipeline_mode = #tpu.pipeline_mode<synchronous>, transform_indices = @transform_2, window_bounds = array<i64: 1, 32>}, {transform_indices = @transform_3, window_bounds = array<i64: 16, 32>}, {pipeline_mode = #tpu.pipeline_mode<synchronous>, transform_indices = @transform_4, window_bounds = array<i64: 1, 32>}, {pipeline_mode = #tpu.pipeline_mode<synchronous>, transform_indices = @transform_5, window_bounds = array<i64: 1, 32>}, {transform_indices = @transform_6, window_bounds = array<i64: 16, 32>}]} {
    %c0 = arith.constant 0 : index
    %c0_0 = arith.constant 0 : index
    %0 = vector.load %arg1[%c0, %c0_0] : memref<16x64xbf16, #tpu.memory_space<vmem>>, vector<16x64xbf16>
    %c0_1 = arith.constant 0 : index
    %c0_2 = arith.constant 0 : index
    %1 = vector.load %arg2[%c0_1, %c0_2] : memref<64x32xbf16, #tpu.memory_space<vmem>>, vector<64x32xbf16>
    %cst = arith.constant dense<0.000000e+00> : vector<16x32xf32>
    %2 = tpu.matmul %0, %1, %cst {dimension_numbers = #tpu.dot_dimension_numbers<[1], [0], [0], [1], [0, 0, 1, 1], [], []>} : vector<16x64xbf16>, vector<64x32xbf16>, vector<16x32xf32> -> vector<16x32xf32>
    %c0_3 = arith.constant 0 : index
    %c0_4 = arith.constant 0 : index
    %3 = vector.load %arg3[%c0_3, %c0_4] : memref<1x32xf32, #tpu.memory_space<vmem>>, vector<1x32xf32>
    %4 = vector.broadcast %3 : vector<1x32xf32> to vector<16x32xf32>
    %5 = arith.addf %2, %4 : vector<16x32xf32>
    %c0_5 = arith.constant 0 : index
    %c0_6 = arith.constant 0 : index
    %6 = vector.load %arg4[%c0_5, %c0_6] : memref<16x32xbf16, #tpu.memory_space<vmem>>, vector<16x32xbf16>
    %7 = arith.extf %6 : vector<16x32xbf16> to vector<16x32xf32>
    %8 = arith.addf %5, %7 : vector<16x32xf32>
    %cst_7 = arith.constant dense<0.000000e+00> : vector<16xf32>
    %9 = vector.multi_reduction <add>, %8, %cst_7 [1] : vector<16x32xf32> to vector<16xf32>
    %10 = vector.shape_cast %9 : vector<16xf32> to vector<16x1xf32>
    %cst_8 = arith.constant 3.200000e+01 : f32
    %11 = vector.broadcast %cst_8 : f32 to vector<16x1xf32>
    %12 = arith.divf %10, %11 : vector<16x1xf32>
    %13 = arith.mulf %8, %8 : vector<16x32xf32>
    %cst_9 = arith.constant dense<0.000000e+00> : vector<16xf32>
    %14 = vector.multi_reduction <add>, %13, %cst_9 [1] : vector<16x32xf32> to vector<16xf32>
    %15 = vector.shape_cast %14 : vector<16xf32> to vector<16x1xf32>
    %cst_10 = arith.constant 3.200000e+01 : f32
    %16 = vector.broadcast %cst_10 : f32 to vector<16x1xf32>
    %17 = arith.divf %15, %16 : vector<16x1xf32>
    %18 = arith.mulf %12, %12 : vector<16x1xf32>
    %19 = arith.subf %17, %18 : vector<16x1xf32>
    %cst_11 = arith.constant 0.000000e+00 : f32
    %20 = vector.broadcast %cst_11 : f32 to vector<16x1xf32>
    %21 = arith.maximumf %19, %20 : vector<16x1xf32>
    %22 = vector.broadcast %12 : vector<16x1xf32> to vector<16x32xf32>
    %23 = arith.subf %8, %22 : vector<16x32xf32>
    %cst_12 = arith.constant 9.99999996E-13 : f32
    %24 = vector.broadcast %cst_12 : f32 to vector<16x1xf32>
    %25 = arith.addf %21, %24 : vector<16x1xf32>
    %26 = math.rsqrt %25 : vector<16x1xf32>
    %27 = vector.broadcast %26 : vector<16x1xf32> to vector<16x32xf32>
    %28 = arith.mulf %23, %27 : vector<16x32xf32>
    %c0_13 = arith.constant 0 : index
    %c0_14 = arith.constant 0 : index
    %29 = vector.load %arg5[%c0_13, %c0_14] : memref<1x32xf32, #tpu.memory_space<vmem>>, vector<1x32xf32>
    %30 = vector.broadcast %29 : vector<1x32xf32> to vector<16x32xf32>
    %31 = arith.mulf %28, %30 : vector<16x32xf32>
    %c0_15 = arith.constant 0 : index
    %c0_16 = arith.constant 0 : index
    %32 = vector.load %arg6[%c0_15, %c0_16] : memref<1x32xf32, #tpu.memory_space<vmem>>, vector<1x32xf32>
    %33 = vector.broadcast %32 : vector<1x32xf32> to vector<16x32xf32>
    %34 = arith.addf %31, %33 : vector<16x32xf32>
    %35 = arith.truncf %34 : vector<16x32xf32> to vector<16x32xbf16>
    %c0_17 = arith.constant 0 : index
    %c0_18 = arith.constant 0 : index
    %36 = vector.load %arg7[%c0_17, %c0_18] : memref<16x32xbf16, #tpu.memory_space<vmem>>, vector<16x32xbf16>
    tpu.vector_store %arg7[%c0_17, %c0_18], %35 {strides = array<i32>} : memref<16x32xbf16, #tpu.memory_space<vmem>>, vector<16x32xbf16>,
    return
  }
  func.func @transform_0(%arg0: i32) -> (i32, i32) {
    %c0_i32 = arith.constant 0 : i32
    %c0_i32_0 = arith.constant 0 : i32
    return %arg0, %c0_i32 : i32, i32
  }
  func.func @transform_1(%arg0: i32) -> (i32, i32) {
    %c0_i32 = arith.constant 0 : i32
    %c0_i32_0 = arith.constant 0 : i32
    %c0_i32_1 = arith.constant 0 : i32
    return %c0_i32, %c0_i32_0 : i32, i32
  }
  func.func @transform_2(%arg0: i32) -> (i32, i32) {
    %c0_i32 = arith.constant 0 : i32
    %c0_i32_0 = arith.constant 0 : i32
    %c0_i32_1 = arith.constant 0 : i32
    return %c0_i32, %c0_i32_0 : i32, i32
  }
  func.func @transform_3(%arg0: i32) -> (i32, i32) {
    %c0_i32 = arith.constant 0 : i32
    %c0_i32_0 = arith.constant 0 : i32
    return %arg0, %c0_i32 : i32, i32
  }
  func.func @transform_4(%arg0: i32) -> (i32, i32) {
    %c0_i32 = arith.constant 0 : i32
    %c0_i32_0 = arith.constant 0 : i32
    %c0_i32_1 = arith.constant 0 : i32
    return %c0_i32, %c0_i32_0 : i32, i32
  }
  func.func @transform_5(%arg0: i32) -> (i32, i32) {
    %c0_i32 = arith.constant 0 : i32
    %c0_i32_0 = arith.constant 0 : i32
    %c0_i32_1 = arith.constant 0 : i32
    return %c0_i32, %c0_i32_0 : i32, i32
  }
  func.func @transform_6(%arg0: i32) -> (i32, i32) {
    %c0_i32 = arith.constant 0 : i32
    %c0_i32_0 = arith.constant 0 : i32
    return %arg0, %c0_i32 : i32, i32
  }
}

module attributes {stable_mosaic.version = 11 : i64} {
  func.func @_matmul_kernel(%arg0: i32, %arg1: i32, %arg2: memref<2x32xbf16, #tpu.memory_space<vmem>>, %arg3: memref<32x32xbf16, #tpu.memory_space<vmem>>, %arg4: memref<1x32xf32, #tpu.memory_space<vmem>>, %arg5: memref<2x32xf32, #tpu.memory_space<vmem>>) attributes {dimension_semantics = [#tpu.dimension_semantics<parallel>, #tpu.dimension_semantics<parallel>], iteration_bounds = array<i64: 1, 1>, scalar_prefetch = 0 : i64, scratch_operands = 0 : i64, tpu.core_type = #tpu.core_type<tc>, window_params = [{transform_indices = @transform_0, window_bounds = array<i64: 2, 32>}, {transform_indices = @transform_1, window_bounds = array<i64: 32, 32>}, {transform_indices = @transform_2, window_bounds = array<i64: 1, 32>}, {transform_indices = @transform_3, window_bounds = array<i64: 2, 32>}]} {
    %c0 = arith.constant 0 : index
    %c0_0 = arith.constant 0 : index
    %0 = vector.load %arg2[%c0, %c0_0] : memref<2x32xbf16, #tpu.memory_space<vmem>>, vector<2x32xbf16>
    %c0_1 = arith.constant 0 : index
    %c0_2 = arith.constant 0 : index
    %1 = vector.load %arg3[%c0_1, %c0_2] : memref<32x32xbf16, #tpu.memory_space<vmem>>, vector<32x32xbf16>
    %cst = arith.constant dense<0.000000e+00> : vector<2x32xf32>
    %2 = tpu.matmul %0, %1, %cst {dimension_numbers = #tpu.dot_dimension_numbers<[1], [0], [0], [1], [0, 0, 1, 1], [], []>} : vector<2x32xbf16>, vector<32x32xbf16>, vector<2x32xf32> -> vector<2x32xf32>
    %c0_3 = arith.constant 0 : index
    %c0_4 = arith.constant 0 : index
    %3 = vector.load %arg4[%c0_3, %c0_4] : memref<1x32xf32, #tpu.memory_space<vmem>>, vector<1x32xf32>
    %4 = vector.broadcast %3 : vector<1x32xf32> to vector<2x32xf32>
    %5 = arith.addf %2, %4 : vector<2x32xf32>
    %6 = math.tanh %5 : vector<2x32xf32>
    %c0_5 = arith.constant 0 : index
    %c0_6 = arith.constant 0 : index
    %7 = vector.load %arg5[%c0_5, %c0_6] : memref<2x32xf32, #tpu.memory_space<vmem>>, vector<2x32xf32>
    tpu.vector_store %arg5[%c0_5, %c0_6], %6 {strides = array<i32>} : memref<2x32xf32, #tpu.memory_space<vmem>>, vector<2x32xf32>,
    return
  }
  func.func @transform_0(%arg0: i32, %arg1: i32) -> (i32, i32) {
    %c0_i32 = arith.constant 0 : i32
    %c0_i32_0 = arith.constant 0 : i32
    return %arg0, %c0_i32 : i32, i32
  }
  func.func @transform_1(%arg0: i32, %arg1: i32) -> (i32, i32) {
    %c0_i32 = arith.constant 0 : i32
    %c0_i32_0 = arith.constant 0 : i32
    return %c0_i32, %arg1 : i32, i32
  }
  func.func @transform_2(%arg0: i32, %arg1: i32) -> (i32, i32) {
    %c0_i32 = arith.constant 0 : i32
    %c0_i32_0 = arith.constant 0 : i32
    return %c0_i32, %arg1 : i32, i32
  }
  func.func @transform_3(%arg0: i32, %arg1: i32) -> (i32, i32) {
    %c0_i32 = arith.constant 0 : i32
    return %arg0, %arg1 : i32, i32
  }
}

module attributes {stable_mosaic.version = 11 : i64} {
  func.func @_loss_kernel(%arg0: memref<2x32xf32, #tpu.memory_space<vmem>>, %arg1: memref<4x32xf32, #tpu.memory_space<vmem>>, %arg2: memref<2x4xf32, #tpu.memory_space<vmem>>, %arg3: memref<1x1xf32, #tpu.memory_space<smem>>) attributes {dimension_semantics = [], scalar_prefetch = 0 : i64, scratch_operands = 0 : i64, tpu.core_type = #tpu.core_type<tc>} {
    %c0 = arith.constant 0 : index
    %c0_0 = arith.constant 0 : index
    %0 = vector.load %arg0[%c0, %c0_0] : memref<2x32xf32, #tpu.memory_space<vmem>>, vector<2x32xf32>
    %1 = arith.mulf %0, %0 : vector<2x32xf32>
    %cst = arith.constant dense<0.000000e+00> : vector<2xf32>
    %2 = vector.multi_reduction <add>, %1, %cst [1] : vector<2x32xf32> to vector<2xf32>
    %3 = vector.shape_cast %2 : vector<2xf32> to vector<2x1xf32>
    %cst_1 = arith.constant 1.000000e-24 : f32
    %4 = vector.broadcast %cst_1 : f32 to vector<2x1xf32>
    %5 = arith.maximumf %3, %4 : vector<2x1xf32>
    %6 = math.rsqrt %5 : vector<2x1xf32>
    %7 = vector.broadcast %6 : vector<2x1xf32> to vector<2x32xf32>
    %8 = arith.mulf %0, %7 : vector<2x32xf32>
    %c0_2 = arith.constant 0 : index
    %c0_3 = arith.constant 0 : index
    %9 = vector.load %arg1[%c0_2, %c0_3] : memref<4x32xf32, #tpu.memory_space<vmem>>, vector<4x32xf32>
    %10 = arith.mulf %9, %9 : vector<4x32xf32>
    %cst_4 = arith.constant dense<0.000000e+00> : vector<4xf32>
    %11 = vector.multi_reduction <add>, %10, %cst_4 [1] : vector<4x32xf32> to vector<4xf32>
    %12 = vector.shape_cast %11 : vector<4xf32> to vector<4x1xf32>
    %cst_5 = arith.constant 1.000000e-24 : f32
    %13 = vector.broadcast %cst_5 : f32 to vector<4x1xf32>
    %14 = arith.maximumf %12, %13 : vector<4x1xf32>
    %15 = math.rsqrt %14 : vector<4x1xf32>
    %16 = vector.broadcast %15 : vector<4x1xf32> to vector<4x32xf32>
    %17 = arith.mulf %9, %16 : vector<4x32xf32>
    %cst_6 = arith.constant dense<0.000000e+00> : vector<2x4xf32>
    %18 = tpu.matmul %8, %17, %cst_6 {dimension_numbers = #tpu.dot_dimension_numbers<[1], [1], [0], [0], [0, 0, 1, 0], [], []>} : vector<2x32xf32>, vector<4x32xf32>, vector<2x4xf32> -> vector<2x4xf32>
    %c0_7 = arith.constant 0 : index
    %c0_8 = arith.constant 0 : index
    %19 = vector.load %arg2[%c0_7, %c0_8] : memref<2x4xf32, #tpu.memory_space<vmem>>, vector<2x4xf32>
    tpu.vector_store %arg2[%c0_7, %c0_8], %18 {strides = array<i32>} : memref<2x4xf32, #tpu.memory_space<vmem>>, vector<2x4xf32>,
    %cst_9 = arith.constant dense<0xFF800000> : vector<2xf32>
    %20 = vector.multi_reduction <maximumf>, %18, %cst_9 [1] : vector<2x4xf32> to vector<2xf32>
    %21 = vector.shape_cast %20 : vector<2xf32> to vector<2x1xf32>
    %22 = vector.broadcast %21 : vector<2x1xf32> to vector<2x4xf32>
    %23 = arith.subf %18, %22 : vector<2x4xf32>
    %24 = math.exp %23 : vector<2x4xf32>
    %cst_10 = arith.constant dense<0.000000e+00> : vector<2xf32>
    %25 = vector.multi_reduction <add>, %24, %cst_10 [1] : vector<2x4xf32> to vector<2xf32>
    %26 = vector.shape_cast %25 : vector<2xf32> to vector<2x1xf32>
    %27 = math.log %26 : vector<2x1xf32>
    %28 = arith.addf %27, %21 : vector<2x1xf32>
    %29 = vector.broadcast %28 : vector<2x1xf32> to vector<2x4xf32>
    %30 = arith.subf %18, %29 : vector<2x4xf32>
    %31 = tpu.iota {dimensions = array<i32: 0>} : vector<2x2xi32>
    %32 = tpu.iota {dimensions = array<i32: 1>} : vector<2x2xi32>
    %33 = arith.cmpi eq, %31, %32 : vector<2x2xi32>
    %34 = arith.extui %33 : vector<2x2xi1> to vector<2x2xi32>
    %35 = arith.sitofp %34 : vector<2x2xi32> to vector<2x2xf32>
    %36 = vector.extract_strided_slice %30 {offsets = [0, 0], sizes = [2, 2], strides = [1, 1]} : vector<2x4xf32> to vector<2x2xf32>
    %37 = arith.mulf %36, %35 : vector<2x2xf32>
    %38 = vector.shape_cast %37 : vector<2x2xf32> to vector<1x2x2xf32>
    %cst_11 = arith.constant dense<0.000000e+00> : vector<1xf32>
    %39 = vector.multi_reduction <add>, %38, %cst_11 [1, 2] : vector<1x2x2xf32> to vector<1xf32>
    %40 = vector.shape_cast %39 : vector<1xf32> to vector<1x1x1xf32>
    %41 = vector.extract %40[0, 0, 0] : f32 from vector<1x1x1xf32>
    %cst_12 = arith.constant 0.000000e+00 : f32
    %42 = arith.subf %cst_12, %41 : f32
    %cst_13 = arith.constant 2.000000e+00 : f32
    %43 = arith.divf %42, %cst_13 : f32
    %c0_14 = arith.constant 0 : index
    %c0_15 = arith.constant 0 : index
    %44 = memref.load %arg3[%c0_14, %c0_15] : memref<1x1xf32, #tpu.memory_space<smem>>
    memref.store %43, %arg3[%c0_14, %c0_15] : memref<1x1xf32, #tpu.memory_space<smem>>
    return
  }
}

</mosaic_0001>

<bundles_post_ra>
// kernel: fwd.51
= control target key start
LH: loop header
LB: loop body
LE: loop exit
PB: predicated region body
PF: predicated region fallthrough
CT: control target
= control target key end

     0   :  { %s569_s9 = smov 0   ;;  %s613_s0 = inlined_call_operand.vmem [shape: bf16[2,8,96], index: 0, kind: input, shape index: {}]   ;;  %s614_s1 = inlined_call_operand.vmem [shape: f32[2,1,8], index: 1, kind: input, shape index: {}]   ;;  %s615_s2 = inlined_call_operand.vmem [shape: bf16[2,8,32], index: 2, kind: output, shape index: {}]  }
   0x1 LB: > { %s464_s10 = sadd.s32 4294967295, %s544_s9   ;;  %p468_p0 = scmp.ge.s32.totalorder %s544_s9, 1  ;;  %s544_s9 = sphi %s569_s9, %s12_s9  }
   0x2   : > { %p119_p1 = scmp.lt.s32.totalorder %s544_s9, 3 }
   0x4   : > { %p120_p2 = pnand %p468_p0, %p119_p1 }
   0x5   : > { %p142_p3 = scmp.lt.s32.totalorder (!%p120_p2), %s464_s10, 1  ;;  %v546_v0 = vmov (!%p120_p2), 0.0   ;;  %vm547_vm0 = vmmov (!%p120_p2), 0   ;;  %s548_s15 = smov (!%p120_p2), 96   ;;  %vm170_vm1 = vcmask (!%p120_p2), 130048   ;;  %vm217_vm2 = vcmask (!%p120_p2), 64512  }
   0x6   : > { %123 = sbr.rel (%p120_p2) target bundleno = 1230 (0x4ce), region = 28  ;;  %489 = vmatprep.subr.bf16.mxu0 (!%p120_p2), %v546_v0  ;;  %491 = vmatprep.mubr.msk.bf16.mxu0 (!%p120_p2), %vm547_vm0, %v546_v0  ;;  %s549_s16 = smov (!%p120_p2), 64   ;;  %vm233_vm3 = vcmask (!%p120_p2), 1043456   ;;  %vm280_vm4 = vcmask (!%p120_p2), 125952   ;;  %vm400_vm5 = vcmask (!%p120_p2), 257152  }
   0x7   : > { %495 = vmatprep.subr.bf16.mxu1 (!%p120_p2), %v546_v0  ;;  %497 = vmatprep.mubr.msk.bf16.mxu1 (!%p120_p2), %vm547_vm0, %v546_v0  ;;  %s550_s17 = smov (!%p120_p2), 80   ;;  %s551_s18 = smov (!%p120_p2), 112  }
   0x8   : > { %s552_s22 = smov (!%p120_p2), 48   ;;  %s553_s26 = smov (!%p120_p2), 16  }
   0xd   : > { %s617_s10 = smov (!%p142_p3, %s464_s10), 1 }
   0xe   : > { %s469_s11 = sshll.u32 %s617_s10, 2  ;;  %s148_s21 = scalar_lea.vmem %s614_s1, %s617_s10 }
   0xf   : > { %s145_s14 = scalar_lea.vmem %s613_s0, %s469_s11  ;;  %v471_v8 = vld [vmem:[%s148_s21] ss:$0 sm:$0xff]  ;;  %s152_s25 = scalar_lea.vmem %s615_s2, %s469_s11 }
  0x10   : > { %v154_v1 = vld [vmem:[%s145_s14] sm:$0xf] }
  0x11   : > { %v472_v2 = vcombine.low %v154_v1, %v154_v1  ;;  %v162_v3 = vunpack.c.l.bf16 %v154_v1 }
  0x13   : > { %168 = vrot.lane.b32.xlu0 %v472_v2, %s548_s15  ;;  %v163_v6 = vmul.f32 0.25, %v162_v3  ;;  %228 = vrot.lane.b32.xlu1 %v472_v2, %s549_s16 }
  0x15   : > { %v164_v7 = vpack.c.bf16 %v163_v6, %v163_v6 }
  0x17   : > { %285 = vrot.lane.b32.xlu1 %v472_v2, %s550_s17 }
  0x1b   : > { %283 = vrot.lane.b32.xlu1 %v164_v7, %s551_s18 }
  0x85   : > { %v169_v4 = vpop.permute.xlu0 %168  ;;  %v229_v15 = vpop.permute.xlu1 %228 }
  0x86   : > { %v175_v5 = vsel %vm170_vm1, %v169_v4, 0  ;;  %v235_v16 = vsel %vm233_vm3, %v229_v15, 0 }
  0x87   : > { %490 = vmatpush3.bf16.xpose.msra.mxu0 %v175_v5  ;;  %496 = vmatpush3.bf16.msra.mxu1 %v235_v16 }
  0x88   : > { %507 = vmatprep.subr.bf16.mxu0 %v546_v0  ;;  %501 = vmatprep.subr.bf16.mxu1 %v546_v0 }
  0x89   : > { %v286_v20 = vpop.permute.xlu1 %285 }
  0x8a   : > { %v291_v22 = vsel %vm170_vm1, %v286_v20, 0 }
  0x8d   : > { %v284_v24 = vpop.permute.xlu1 %283 }
  0x8e   : > { %492 = vmatmul.mubr.msk.bf16.vlgmr.msra.gmra.mrb[0].mxu0 %vm170_vm1, %v164_v7 }
  0x8f   : > { %509 = vmatprep.mubr.msk.bf16.mxu0 %vm547_vm0, %v546_v0 }
 0x161   : > { %v211_v9 = vpop.f32.mrb[0].mxu0 }
 0x162   : > { %v212_v10 = vadd.f32 %v471_v8, %v211_v9  ;;  %v493_v11 = vpop.f32.mrb[1].mxu0 }
 0x163   : > { %v214_v12 = vpop.f32.mrb[2].mxu0 }
 0x164   : > { %v494_v13 = vpop.f32.mrb[3].mxu0  ;;  %v218_v14 = vsel %vm217_vm2, %v212_v10, -inf }
 0x165   : > { %219 = vmax.xlane.f32.xlu0 %v218_v14 }
 0x17b   : > { %343 = vrot.lane.b32.xlu0 %v472_v2, %s552_s22 }
 0x1f2   : > { %v220_v17 = vpop.xlane.xlu0 %219 }
 0x1f3   : > { %v221_v18 = vsub.f32 %v212_v10, %v220_v17 }
 0x1f5   : > { %v222_v19 = vmul.f32 1.442695, %v221_v18 }
 0x1f6   : > { %v344_v35 = vpop.permute.xlu0 %343 }
 0x1f7   : > { %530 = vpow2.f32 %v222_v19  ;;  %v349_v36 = vsel %vm233_vm3, %v344_v35, 0 }
 0x1f8   : > { %508 = vmatpush3.bf16.msra.mxu0 %v349_v36 }
 0x201   : > { %v531_v21 = vpop.eup %530 }
 0x202   : > { %v227_v23 = vpack.c.bf16 %v531_v21, %v531_v21  ;;  %v224_v43 = vsel %vm217_vm2, %v531_v21, 0.0 }
 0x204   : > { %498 = vmatmul.mubr.msk.bf16.vlgmr.msra.gmra.mrb[0].mxu1 %vm217_vm2, %v227_v23 }
 0x205   : > { %502 = vmatpush3.bf16.xpose.msra.mxu1 %v291_v22  ;;  %503 = vmatprep.mubr.msk.bf16.mxu1 %vm547_vm0, %v546_v0 }
 0x20c   : > { %504 = vmatmul.mubr.msk.bf16.vlgmr.msra.gmra.mrb[4].mxu1 %vm170_vm1, %v284_v24 }
 0x2d7   : > { %v271_v25 = vpop.f32.mrb[0].mxu1 }
 0x2d8   : > { %v499_v26 = vpop.f32.mrb[1].mxu1 }
 0x2d9   : > { %v274_v27 = vpop.f32.mrb[2].mxu1 }
 0x2da   : > { %v500_v28 = vpop.f32.mrb[3].mxu1 }
 0x2df   : > { %v327_v29 = vpop.f32.mrb[4].mxu1 }
 0x2e0   : > { %v328_v30 = vadd.f32 %v471_v8, %v327_v29  ;;  %v505_v31 = vpop.f32.mrb[5].mxu1 }
 0x2e1   : > { %v330_v32 = vpop.f32.mrb[6].mxu1 }
 0x2e2   : > { %v506_v33 = vpop.f32.mrb[7].mxu1  ;;  %v333_v34 = vsel %vm217_vm2, %v328_v30, -inf }
 0x2e3   : > { %334 = vmax.xlane.f32.xlu1 %v333_v34 }
 0x370   : > { %v335_v37 = vpop.xlane.xlu1 %334 }
 0x371   : > { %v336_v38 = vsub.f32 %v328_v30, %v335_v37 }
 0x373   : > { %v337_v39 = vmul.f32 1.442695, %v336_v38 }
 0x375   : > { %532 = vpow2.f32 %v337_v39 }
 0x37f   : > { %v533_v40 = vpop.eup %532 }
 0x380   : > { %v339_v41 = vsel %vm217_vm2, %v533_v40, 0.0  ;;  %v342_v42 = vpack.c.bf16 %v533_v40, %v533_v40 }
 0x381   : > { %340 = vadd.xlane.f32.xlu1 %v339_v41 }
 0x382   : > { %510 = vmatmul.mubr.msk.bf16.vlgmr.msra.gmra.mrb[4].mxu0 %vm217_vm2, %v342_v42 }
 0x385   : > { %225 = vadd.xlane.f32.xlu1 %v224_v43 }
 0x40e   : > { %v341_v44 = vpop.xlane.xlu1 %340 }
 0x412   : > { %v226_v45 = vpop.xlane.xlu1 %225 }
 0x413   : > { %534 = vrcp.f32 %v226_v45 }
 0x414   : > { %536 = vrcp.f32 %v341_v44 }
 0x41d   : > { %v535_v46 = vpop.eup %534 }
 0x41e   : > { %v278_v47 = vmul.f32 %v535_v46, %v271_v25  ;;  %v537_v49 = vpop.eup %536 }
 0x420   : > { %v279_v48 = vpack.c.bf16 %v278_v47, %v278_v47 }
 0x422   : > { %281 = vst.msk [vmem:[%s152_s25] sm:$0xf] %vm280_vm4, %v279_v48 }
 0x455   : > { %v385_v50 = vpop.f32.mrb[4].mxu0 }
 0x456   : > { %v392_v51 = vmul.f32 %v537_v49, %v385_v50  ;;  %v511_v52 = vpop.f32.mrb[5].mxu0 }
 0x457   : > { %v388_v53 = vpop.f32.mrb[6].mxu0 }
 0x458   : > { %v480_v54 = vpack.c.bf16 %v392_v51, %v392_v51  ;;  %v512_v55 = vpop.f32.mrb[7].mxu0 }
 0x45a   : > { %397 = vrot.lane.b32.xlu1 %v480_v54, %s553_s26 }
 0x4cc   : > { %v398_v56 = vpop.permute.xlu1 %397 }
 0x4cd   : > { %401 = vst.msk [vmem:[%s152_s25] sm:$0xf] %vm400_vm5, %v398_v56 }
 0x4ce PF: > { %s12_s9 = sadd.s32 1, %s544_s9  }
 0x4cf   : > { %p9_p4 = scmp.ge.s32.totalorder %s12_s9, 4  }
 0x4d1   :  { %11 = sbr.rel (!%p9_p4) target bundleno = 1 (0x1), region = 61 }

// kernel: fwd.49
= control target key start
LH: loop header
LB: loop body
LE: loop exit
PB: predicated region body
PF: predicated region fallthrough
CT: control target
= control target key end

     0   :  { %vm16_vm0 = vcmask 261120   ;;  %vm76_vm1 = vcmask 257024   ;;  %s131_s0 = inlined_call_operand.vmem [shape: f32[16,32], index: 0, kind: input, shape index: {}]   ;;  %s132_s1 = inlined_call_operand.vmem [shape: f32[1,32], index: 1, kind: input, shape index: {}]   ;;  %s133_s2 = inlined_call_operand.vmem [shape: f32[1,32], index: 2, kind: input, shape index: {}]   ;;  %s134_s3 = inlined_call_operand.vmem [shape: bf16[16,32], index: 3, kind: output, shape index: {}]  }
   0x1   :  { %v14_v0 = vld [vmem:[%s131_s0] sm:$0xff]  ;;  %v15_v1 = vld [vmem:[%s131_s0 + $0x8] sm:$0xff] }
   0x2   :  { %v17_v2 = vsel %vm16_vm0, %v14_v0, 0.0  ;;  %v26_v3 = vmul.f32 %v14_v0, %v14_v0  ;;  %v27_v4 = vmul.f32 %v15_v1, %v15_v1  ;;  %v20_v6 = vsel %vm16_vm0, %v15_v1, 0.0  ;;  %v83_v26 = vld [vmem:[%s132_s1] ss:$0 sm:$0xff] }
   0x3   :  { %18 = vadd.xlane.f32.xlu0 %v17_v2  ;;  %v84_v28 = vld [vmem:[%s133_s2] ss:$0 sm:$0xff] }
   0x4   :  { %v28_v5 = vsel %vm16_vm0, %v26_v3, 0.0  ;;  %v31_v7 = vsel %vm16_vm0, %v27_v4, 0.0 }
   0x5   :  { %29 = vadd.xlane.f32.xlu1 %v28_v5 }
   0x7   :  { %21 = vadd.xlane.f32.xlu0 %v20_v6 }
   0x9   :  { %32 = vadd.xlane.f32.xlu1 %v31_v7 }
  0x90   :  { %v19_v8 = vpop.xlane.xlu0 %18 }
  0x91   :  { %v24_v9 = vmul.f32 0.03125, %v19_v8 }
  0x92   :  { %v30_v10 = vpop.xlane.xlu1 %29 }
  0x93   :  { %v36_v11 = vmul.f32 %v24_v9, %v24_v9  ;;  %v34_v12 = vmul.f32 0.03125, %v30_v10  ;;  %v42_v24 = vsub.f32 %v14_v0, %v24_v9 }
  0x94   :  { %v22_v13 = vpop.xlane.xlu0 %21 }
  0x95   :  { %v38_v14 = vsub.f32 %v34_v12, %v36_v11  ;;  %v25_v15 = vmul.f32 0.03125, %v22_v13 }
  0x96   :  { %v33_v16 = vpop.xlane.xlu1 %32 }
  0x97   :  { %v40_v17 = vmax.f32 %v38_v14, 0.0  ;;  %v37_v18 = vmul.f32 %v25_v15, %v25_v15  ;;  %v35_v19 = vmul.f32 0.03125, %v33_v16  ;;  %v43_v30 = vsub.f32 %v15_v1, %v25_v15 }
  0x99   :  { %v44_v20 = vadd.f32 1e-12, %v40_v17  ;;  %v39_v21 = vsub.f32 %v35_v19, %v37_v18 }
  0x9b   :  { %89 = vrsqrt.f32 %v44_v20  ;;  %v41_v22 = vmax.f32 %v39_v21, 0.0 }
  0x9d   :  { %v45_v23 = vadd.f32 1e-12, %v41_v22 }
  0x9f   :  { %91 = vrsqrt.f32 %v45_v23 }
  0xa5   :  { %v90_v25 = vpop.eup %89 }
  0xa6   :  { %v48_v27 = vmul.f32 %v90_v25, %v42_v24 }
  0xa8   :  { %v57_v29 = vmul.f32 %v83_v26, %v48_v27 }
  0xa9   :  { %v92_v31 = vpop.eup %91 }
  0xaa   :  { %v66_v32 = vadd.f32 %v84_v28, %v57_v29  ;;  %v49_v33 = vmul.f32 %v92_v31, %v43_v30 }
  0xac   :  { %v87_v34 = vpack.c.bf16 %v66_v32, %v66_v32  ;;  %v58_v35 = vmul.f32 %v83_v26, %v49_v33 }
  0xae   :  { %77 = vst.msk [vmem:[%s134_s3] sm:$0xf] %vm76_vm1, %v87_v34  ;;  %v67_v36 = vadd.f32 %v84_v28, %v58_v35 }
  0xb0   :  { %v88_v37 = vpack.c.bf16 %v67_v36, %v67_v36 }
  0xb2   :  { %78 = vst.msk [vmem:[%s134_s3 + $0x4] sm:$0xf] %vm76_vm1, %v88_v37 }

// kernel: fwd.50
= control target key start
LH: loop header
LB: loop body
LE: loop exit
PB: predicated region body
PF: predicated region fallthrough
CT: control target
= control target key end

     0   :  { %v130_v0 = vmov 0.0   ;;  %vm131_vm0 = vmmov 0   ;;  %vm45_vm1 = vcmask 261120   ;;  %vm98_vm2 = vcmask 781312   ;;  %s170_s1 = inlined_call_operand.vmem [shape: bf16[32,96], index: 1, kind: input, shape index: {}]   ;;  %s171_s0 = inlined_call_operand.vmem [shape: bf16[16,32], index: 0, kind: input, shape index: {}]   ;;  %s172_s2 = inlined_call_operand.vmem [shape: f32[1,96], index: 2, kind: input, shape index: {}]   ;;  %s173_s3 = inlined_call_operand.vmem [shape: bf16[16,96], index: 3, kind: output, shape index: {}]  }
   0x1   :  { %117 = vmatprep.subr.bf16.mxu0 %v130_v0  ;;  %v127_v1 = vld [vmem:[%s170_s1] sm:$0xff]   ;;  %121 = vmatprep.mubr.msk.bf16.mxu0 %vm131_vm0, %v130_v0  ;;  %v128_v2 = vld [vmem:[%s170_s1 + $0x8] sm:$0xff]  }
   0x2   :  { %118 = vmatpush3.bf16.msra.mxu0 %v127_v1  ;;  %v129_v3 = vld [vmem:[%s171_s0] sm:$0xff]  }
   0x3   :  { %119 = vmatprep.subr.bf16.mxu0 %v130_v0  ;;  %v105_v4 = vld [vmem:[%s172_s2] ss:$0 sm:$0xff] }
   0x6   :  { %120 = vmatpush3.bf16.msra.mxu0 %v128_v2 }
   0x9   :  { %122 = vmatmul.mubr.msk.bf16.vlgmr.msra.gmra.mrb[0].mxu0 %vm45_vm1, %v129_v3 }
  0xdc   :  { %v83_v5 = vpop.f32.mrb[0].mxu0 }
  0xdd   :  { %v84_v6 = vadd.f32 %v105_v4, %v83_v5  ;;  %v123_v7 = vpop.f32.mrb[1].mxu0 }
  0xde   :  { %v86_v8 = vpop.f32.mrb[2].mxu0 }
  0xdf   :  { %v112_v9 = vpack.c.bf16 %v84_v6, %v84_v6  ;;  %v87_v10 = vadd.f32 %v105_v4, %v86_v8  ;;  %v124_v11 = vpop.f32.mrb[3].mxu0 }
  0xe1   :  { %99 = vst.msk [vmem:[%s173_s3] sm:$0xf] %vm98_vm2, %v112_v9  ;;  %v113_v12 = vpack.c.bf16 %v87_v10, %v87_v10 }
  0xe3   :  { %100 = vst.msk [vmem:[%s173_s3 + $0x4] sm:$0xf] %vm98_vm2, %v113_v12 }

// kernel: fwd.52
= control target key start
LH: loop header
LB: loop body
LE: loop exit
PB: predicated region body
PF: predicated region fallthrough
CT: control target
= control target key end

     0   :  { %v206_v0 = vmov 0.0   ;;  %vm207_vm0 = vmmov 0   ;;  %vm54_vm1 = vcmask 261120   ;;  %vm164_vm2 = vcmask 257024   ;;  %s275_s1 = inlined_call_operand.vmem [shape: bf16[32,32], index: 1, kind: input, shape index: {}]   ;;  %s276_s0 = inlined_call_operand.vmem [shape: bf16[16,32], index: 0, kind: input, shape index: {}]   ;;  %s277_s3 = inlined_call_operand.vmem [shape: bf16[16,32], index: 3, kind: input, shape index: {}]   ;;  %s278_s2 = inlined_call_operand.vmem [shape: f32[1,32], index: 2, kind: input, shape index: {}]   ;;  %s279_s4 = inlined_call_operand.vmem [shape: f32[1,32], index: 4, kind: input, shape index: {}]   ;;  %s280_s5 = inlined_call_operand.vmem [shape: f32[1,32], index: 5, kind: input, shape index: {}]   ;;  %s281_s6 = inlined_call_operand.vmem [shape: bf16[16,32], index: 6, kind: output, shape index: {}]  }
   0x1   :  { %189 = vmatprep.subr.bf16.mxu0 %v206_v0  ;;  %v199_v1 = vld [vmem:[%s275_s1] sm:$0xff]   ;;  %193 = vmatprep.mubr.msk.bf16.mxu0 %vm207_vm0, %v206_v0  ;;  %v200_v2 = vld [vmem:[%s275_s1 + $0x8] sm:$0xff]  }
   0x2   :  { %190 = vmatpush3.bf16.msra.mxu0 %v199_v1  ;;  %v201_v3 = vld [vmem:[%s276_s0] sm:$0xff]  }
   0x3   :  { %191 = vmatprep.subr.bf16.mxu0 %v206_v0  ;;  %v183_v4 = vld [vmem:[%s277_s3] sm:$0xff]  }
   0x4   :  { %v171_v5 = vld [vmem:[%s278_s2] ss:$0 sm:$0xff]  ;;  %v184_v6 = vunpack.c.l.bf16 %v183_v4  ;;  %v185_v10 = vunpack.c.h.bf16 %v183_v4 }
   0x5   :  { %v176_v40 = vld [vmem:[%s279_s4] ss:$0 sm:$0xff] }
   0x6   :  { %192 = vmatpush3.bf16.msra.mxu0 %v200_v2  ;;  %v177_v42 = vld [vmem:[%s280_s5] ss:$0 sm:$0xff] }
   0x9   :  { %194 = vmatmul.mubr.msk.bf16.vlgmr.msra.gmra.mrb[0].mxu0 %vm54_vm1, %v201_v3 }
  0xdc   :  { %v92_v7 = vpop.f32.mrb[0].mxu0 }
  0xdd   :  { %v93_v8 = vadd.f32 %v171_v5, %v92_v7  ;;  %v195_v9 = vpop.f32.mrb[1].mxu0 }
  0xde   :  { %v95_v11 = vpop.f32.mrb[2].mxu0 }
  0xdf   :  { %v103_v12 = vadd.f32 %v184_v6, %v93_v8  ;;  %v96_v13 = vadd.f32 %v171_v5, %v95_v11  ;;  %v196_v14 = vpop.f32.mrb[3].mxu0 }
  0xe1   :  { %v104_v15 = vadd.f32 %v185_v10, %v96_v13  ;;  %v105_v16 = vsel %vm54_vm1, %v103_v12, 0.0  ;;  %v114_v17 = vmul.f32 %v103_v12, %v103_v12 }
  0xe2   :  { %106 = vadd.xlane.f32.xlu0 %v105_v16 }
  0xe3   :  { %v116_v18 = vsel %vm54_vm1, %v114_v17, 0.0  ;;  %v115_v19 = vmul.f32 %v104_v15, %v104_v15  ;;  %v108_v20 = vsel %vm54_vm1, %v104_v15, 0.0 }
  0xe4   :  { %117 = vadd.xlane.f32.xlu1 %v116_v18 }
  0xe5   :  { %v119_v21 = vsel %vm54_vm1, %v115_v19, 0.0 }
  0xe6   :  { %109 = vadd.xlane.f32.xlu0 %v108_v20 }
  0xe8   :  { %120 = vadd.xlane.f32.xlu1 %v119_v21 }
 0x16f   :  { %v107_v22 = vpop.xlane.xlu0 %106 }
 0x170   :  { %v112_v23 = vmul.f32 0.03125, %v107_v22 }
 0x171   :  { %v118_v24 = vpop.xlane.xlu1 %117 }
 0x172   :  { %v124_v25 = vmul.f32 %v112_v23, %v112_v23  ;;  %v122_v26 = vmul.f32 0.03125, %v118_v24  ;;  %v130_v38 = vsub.f32 %v103_v12, %v112_v23 }
 0x173   :  { %v110_v27 = vpop.xlane.xlu0 %109 }
 0x174   :  { %v126_v28 = vsub.f32 %v122_v26, %v124_v25  ;;  %v113_v29 = vmul.f32 0.03125, %v110_v27 }
 0x175   :  { %v121_v30 = vpop.xlane.xlu1 %120 }
 0x176   :  { %v128_v31 = vmax.f32 %v126_v28, 0.0  ;;  %v125_v32 = vmul.f32 %v113_v29, %v113_v29  ;;  %v123_v33 = vmul.f32 0.03125, %v121_v30  ;;  %v131_v44 = vsub.f32 %v104_v15, %v113_v29 }
 0x178   :  { %v132_v34 = vadd.f32 1e-12, %v128_v31  ;;  %v127_v35 = vsub.f32 %v123_v33, %v125_v32 }
 0x17a   :  { %202 = vrsqrt.f32 %v132_v34  ;;  %v129_v36 = vmax.f32 %v127_v35, 0.0 }
 0x17c   :  { %v133_v37 = vadd.f32 1e-12, %v129_v36 }
 0x17e   :  { %204 = vrsqrt.f32 %v133_v37 }
 0x184   :  { %v203_v39 = vpop.eup %202 }
 0x185   :  { %v136_v41 = vmul.f32 %v203_v39, %v130_v38 }
 0x187   :  { %v145_v43 = vmul.f32 %v176_v40, %v136_v41 }
 0x188   :  { %v205_v45 = vpop.eup %204 }
 0x189   :  { %v154_v46 = vadd.f32 %v177_v42, %v145_v43  ;;  %v137_v47 = vmul.f32 %v205_v45, %v131_v44 }
 0x18b   :  { %v180_v48 = vpack.c.bf16 %v154_v46, %v154_v46  ;;  %v146_v49 = vmul.f32 %v176_v40, %v137_v47 }
 0x18d   :  { %165 = vst.msk [vmem:[%s281_s6] sm:$0xf] %vm164_vm2, %v180_v48  ;;  %v155_v50 = vadd.f32 %v177_v42, %v146_v49 }
 0x18f   :  { %v181_v51 = vpack.c.bf16 %v155_v50, %v155_v50 }
 0x191   :  { %166 = vst.msk [vmem:[%s281_s6 + $0x4] sm:$0xf] %vm164_vm2, %v181_v51 }

// kernel: fwd.53
= control target key start
LH: loop header
LB: loop body
LE: loop exit
PB: predicated region body
PF: predicated region fallthrough
CT: control target
= control target key end

     0   :  { %v152_v0 = vmov 0.0   ;;  %vm153_vm0 = vmmov 0   ;;  %vm45_vm1 = vcmask 261120   ;;  %vm116_vm2 = vcmask 519168   ;;  %s192_s1 = inlined_call_operand.vmem [shape: bf16[32,64], index: 1, kind: input, shape index: {}]   ;;  %s193_s0 = inlined_call_operand.vmem [shape: bf16[16,32], index: 0, kind: input, shape index: {}]   ;;  %s194_s2 = inlined_call_operand.vmem [shape: f32[1,64], index: 2, kind: input, shape index: {}]   ;;  %s195_s3 = inlined_call_operand.vmem [shape: bf16[16,64], index: 3, kind: output, shape index: {}]  }
   0x1   :  { %135 = vmatprep.subr.bf16.mxu0 %v152_v0  ;;  %v145_v1 = vld [vmem:[%s192_s1] sm:$0xff]   ;;  %139 = vmatprep.mubr.msk.bf16.mxu0 %vm153_vm0, %v152_v0  ;;  %v146_v2 = vld [vmem:[%s192_s1 + $0x8] sm:$0xff]  }
   0x2   :  { %136 = vmatpush3.bf16.msra.mxu0 %v145_v1  ;;  %v147_v3 = vld [vmem:[%s193_s0] sm:$0xff]  }
   0x3   :  { %137 = vmatprep.subr.bf16.mxu0 %v152_v0  ;;  %v123_v4 = vld [vmem:[%s194_s2] ss:$0 sm:$0xff] }
   0x6   :  { %138 = vmatpush3.bf16.msra.mxu0 %v146_v2 }
   0x9   :  { %140 = vmatmul.mubr.msk.bf16.vlgmr.msra.gmra.mrb[0].mxu0 %vm45_vm1, %v147_v3 }
  0xdc   :  { %v83_v5 = vpop.f32.mrb[0].mxu0 }
  0xdd   :  { %v84_v6 = vadd.f32 %v123_v4, %v83_v5  ;;  %v141_v7 = vpop.f32.mrb[1].mxu0 }
  0xde   :  { %v86_v8 = vpop.f32.mrb[2].mxu0 }
  0xdf   :  { %v90_v9 = vmul.f32 %v84_v6, %v84_v6  ;;  %v87_v10 = vadd.f32 %v123_v4, %v86_v8  ;;  %v142_v11 = vpop.f32.mrb[3].mxu0 }
  0xe1   :  { %v92_v12 = vmul.f32 %v90_v9, %v84_v6  ;;  %v91_v13 = vmul.f32 %v87_v10, %v87_v10 }
  0xe3   :  { %v94_v14 = vmul.f32 0.044715, %v92_v12  ;;  %v93_v15 = vmul.f32 %v91_v13, %v87_v10 }
  0xe5   :  { %v96_v16 = vadd.f32 %v94_v14, %v84_v6  ;;  %v95_v17 = vmul.f32 0.044715, %v93_v15 }
  0xe7   :  { %v98_v18 = vmul.f32 0.7978846, %v96_v16  ;;  %v97_v19 = vadd.f32 %v95_v17, %v87_v10 }
  0xe9   :  { %148 = vtanh.f32 %v98_v18  ;;  %v99_v20 = vmul.f32 0.7978846, %v97_v19 }
  0xeb   :  { %150 = vtanh.f32 %v99_v20 }
  0xf3   :  { %v149_v21 = vpop.eup %148 }
  0xf4   :  { %v102_v22 = vadd.f32 1.0, %v149_v21 }
  0xf5   :  { %v151_v23 = vpop.eup %150 }
  0xf6   :  { %v104_v24 = vmul.f32 0.5, %v102_v22  ;;  %v103_v25 = vadd.f32 1.0, %v151_v23 }
  0xf8   :  { %v106_v26 = vmul.f32 %v104_v24, %v84_v6  ;;  %v105_v27 = vmul.f32 0.5, %v103_v25 }
  0xfa   :  { %v130_v28 = vpack.c.bf16 %v106_v26, %v106_v26  ;;  %v107_v29 = vmul.f32 %v105_v27, %v87_v10 }
  0xfc   :  { %117 = vst.msk [vmem:[%s195_s3] sm:$0xf] %vm116_vm2, %v130_v28  ;;  %v131_v30 = vpack.c.bf16 %v107_v29, %v107_v29 }
  0xfe   :  { %118 = vst.msk [vmem:[%s195_s3 + $0x4] sm:$0xf] %vm116_vm2, %v131_v30 }

// kernel: fwd.60
= control target key start
LH: loop header
LB: loop body
LE: loop exit
PB: predicated region body
PF: predicated region fallthrough
CT: control target
= control target key end

     0   :  { %v111_v0 = vmov 0.0   ;;  %vm112_vm0 = vmmov 0   ;;  %vm39_vm1 = vcmask 261120   ;;  %vm84_vm2 = vcmask 254976   ;;  %s148_s1 = inlined_call_operand.vmem [shape: bf16[32,32], index: 1, kind: input, shape index: {}]   ;;  %s149_s0 = inlined_call_operand.vmem [shape: bf16[2,32], index: 0, kind: input, shape index: {}]   ;;  %s150_s2 = inlined_call_operand.vmem [shape: f32[1,32], index: 2, kind: input, shape index: {}]   ;;  %s151_s3 = inlined_call_operand.vmem [shape: f32[2,32], index: 3, kind: output, shape index: {}]  }
   0x1   :  { %97 = vmatprep.subr.bf16.mxu0 %v111_v0  ;;  %v107_v1 = vld [vmem:[%s148_s1] sm:$0xff]   ;;  %101 = vmatprep.mubr.msk.bf16.mxu0 %vm112_vm0, %v111_v0  ;;  %v108_v2 = vld [vmem:[%s148_s1 + $0x8] sm:$0xff]  }
   0x2   :  { %98 = vmatpush3.bf16.msra.mxu0 %v107_v1  ;;  %v15_v3 = vld [vmem:[%s149_s0] sm:$0x1] }
   0x3   :  { %99 = vmatprep.subr.bf16.mxu0 %v111_v0  ;;  %v90_v4 = vld [vmem:[%s150_s2] ss:$0 sm:$0xff] }
   0x6   :  { %100 = vmatpush3.bf16.msra.mxu0 %v108_v2 }
   0x9   :  { %102 = vmatmul.mubr.msk.bf16.vlgmr.msra.gmra.mrb[0].mxu0 %vm39_vm1, %v15_v3 }
  0xdc   :  { %v77_v5 = vpop.f32.mrb[0].mxu0 }
  0xdd   :  { %v78_v6 = vadd.f32 %v90_v4, %v77_v5  ;;  %v103_v7 = vpop.f32.mrb[1].mxu0 }
  0xde   :  { %v80_v8 = vpop.f32.mrb[2].mxu0 }
  0xdf   :  { %109 = vtanh.f32 %v78_v6  ;;  %v104_v9 = vpop.f32.mrb[3].mxu0 }
  0xe9   :  { %v110_v10 = vpop.eup %109 }
  0xea   :  { %85 = vst.msk [vmem:[%s151_s3] sm:$0x3] %vm84_vm2, %v110_v10 }

// kernel: fwd.54
= control target key start
LH: loop header
LB: loop body
LE: loop exit
PB: predicated region body
PF: predicated region fallthrough
CT: control target
= control target key end

     0   :  { %v233_v0 = vmov 0.0   ;;  %vm234_vm0 = vmmov 0   ;;  %vm70_vm1 = vcmask 523264   ;;  %vm121_vm2 = vcmask 261120   ;;  %s303_s1 = inlined_call_operand.vmem [shape: bf16[64,32], index: 1, kind: input, shape index: {}]   ;;  %s304_s0 = inlined_call_operand.vmem [shape: bf16[16,64], index: 0, kind: input, shape index: {}]   ;;  %s305_s3 = inlined_call_operand.vmem [shape: bf16[16,32], index: 3, kind: input, shape index: {}]   ;;  %s306_s2 = inlined_call_operand.vmem [shape: f32[1,32], index: 2, kind: input, shape index: {}]   ;;  %s307_s4 = inlined_call_operand.vmem [shape: f32[1,32], index: 4, kind: input, shape index: {}]   ;;  %s308_s5 = inlined_call_operand.vmem [shape: f32[1,32], index: 5, kind: input, shape index: {}]   ;;  %s309_s6 = inlined_call_operand.vmem [shape: bf16[16,32], index: 6, kind: output, shape index: {}]  }
   0x1   :  { %210 = vmatprep.subr.bf16.mxu0 %v233_v0  ;;  %v224_v1 = vld [vmem:[%s303_s1] sm:$0xff]   ;;  %218 = vmatprep.mubr.msk.bf16.mxu0 %vm234_vm0, %v233_v0  ;;  %v225_v2 = vld [vmem:[%s303_s1 + $0x8] sm:$0xff]   ;;  %v226_v3 = vld [vmem:[%s303_s1 + $0x10] sm:$0xff]   ;;  %vm181_vm3 = vcmask 257024  }
   0x2   :  { %211 = vmatpush3.bf16.msra.mxu0 %v224_v1  ;;  %v227_v4 = vld [vmem:[%s303_s1 + $0x18] sm:$0xff]   ;;  %v228_v5 = vld [vmem:[%s304_s0] sm:$0xff]  }
   0x3   :  { %212 = vmatprep.subr.bf16.mxu0 %v233_v0  ;;  %v202_v6 = vld [vmem:[%s305_s3] sm:$0xff]  }
   0x4   :  { %v188_v7 = vld [vmem:[%s306_s2] ss:$0 sm:$0xff]  ;;  %v203_v8 = vunpack.c.l.bf16 %v202_v6  ;;  %v204_v12 = vunpack.c.h.bf16 %v202_v6 }
   0x5   :  { %v195_v42 = vld [vmem:[%s307_s4] ss:$0 sm:$0xff] }
   0x6   :  { %213 = vmatpush3.bf16.msra.mxu0 %v225_v2  ;;  %v196_v44 = vld [vmem:[%s308_s5] ss:$0 sm:$0xff] }
   0x7   :  { %214 = vmatprep.subr.bf16.mxu0 %v233_v0 }
   0xa   :  { %215 = vmatpush3.bf16.msra.mxu0 %v226_v3 }
   0xb   :  { %216 = vmatprep.subr.bf16.mxu0 %v233_v0 }
   0xe   :  { %217 = vmatpush3.bf16.msra.mxu0 %v227_v4 }
  0x11   :  { %219 = vmatmul.mubr.msk.bf16.vlgmr.msra.gmra.mrb[0].mxu0 %vm70_vm1, %v228_v5 }
  0xe4   :  { %v108_v9 = vpop.f32.mrb[0].mxu0 }
  0xe5   :  { %v109_v10 = vadd.f32 %v188_v7, %v108_v9  ;;  %v220_v11 = vpop.f32.mrb[1].mxu0 }
  0xe6   :  { %v111_v13 = vpop.f32.mrb[2].mxu0 }
  0xe7   :  { %v119_v14 = vadd.f32 %v203_v8, %v109_v10  ;;  %v112_v15 = vadd.f32 %v188_v7, %v111_v13  ;;  %v221_v16 = vpop.f32.mrb[3].mxu0 }
  0xe9   :  { %v120_v17 = vadd.f32 %v204_v12, %v112_v15  ;;  %v122_v18 = vsel %vm121_vm2, %v119_v14, 0.0  ;;  %v131_v19 = vmul.f32 %v119_v14, %v119_v14 }
  0xea   :  { %123 = vadd.xlane.f32.xlu0 %v122_v18 }
  0xeb   :  { %v133_v20 = vsel %vm121_vm2, %v131_v19, 0.0  ;;  %v132_v21 = vmul.f32 %v120_v17, %v120_v17  ;;  %v125_v22 = vsel %vm121_vm2, %v120_v17, 0.0 }
  0xec   :  { %134 = vadd.xlane.f32.xlu1 %v133_v20 }
  0xed   :  { %v136_v23 = vsel %vm121_vm2, %v132_v21, 0.0 }
  0xee   :  { %126 = vadd.xlane.f32.xlu0 %v125_v22 }
  0xf0   :  { %137 = vadd.xlane.f32.xlu1 %v136_v23 }
 0x177   :  { %v124_v24 = vpop.xlane.xlu0 %123 }
 0x178   :  { %v129_v25 = vmul.f32 0.03125, %v124_v24 }
 0x179   :  { %v135_v26 = vpop.xlane.xlu1 %134 }
 0x17a   :  { %v141_v27 = vmul.f32 %v129_v25, %v129_v25  ;;  %v139_v28 = vmul.f32 0.03125, %v135_v26  ;;  %v147_v40 = vsub.f32 %v119_v14, %v129_v25 }
 0x17b   :  { %v127_v29 = vpop.xlane.xlu0 %126 }
 0x17c   :  { %v143_v30 = vsub.f32 %v139_v28, %v141_v27  ;;  %v130_v31 = vmul.f32 0.03125, %v127_v29 }
 0x17d   :  { %v138_v32 = vpop.xlane.xlu1 %137 }
 0x17e   :  { %v145_v33 = vmax.f32 %v143_v30, 0.0  ;;  %v142_v34 = vmul.f32 %v130_v31, %v130_v31  ;;  %v140_v35 = vmul.f32 0.03125, %v138_v32  ;;  %v148_v46 = vsub.f32 %v120_v17, %v130_v31 }
 0x180   :  { %v149_v36 = vadd.f32 1e-12, %v145_v33  ;;  %v144_v37 = vsub.f32 %v140_v35, %v142_v34 }
 0x182   :  { %229 = vrsqrt.f32 %v149_v36  ;;  %v146_v38 = vmax.f32 %v144_v37, 0.0 }
 0x184   :  { %v150_v39 = vadd.f32 1e-12, %v146_v38 }
 0x186   :  { %231 = vrsqrt.f32 %v150_v39 }
 0x18c   :  { %v230_v41 = vpop.eup %229 }
 0x18d   :  { %v153_v43 = vmul.f32 %v230_v41, %v147_v40 }
 0x18f   :  { %v162_v45 = vmul.f32 %v195_v42, %v153_v43 }
 0x190   :  { %v232_v47 = vpop.eup %231 }
 0x191   :  { %v171_v48 = vadd.f32 %v196_v44, %v162_v45  ;;  %v154_v49 = vmul.f32 %v232_v47, %v148_v46 }
 0x193   :  { %v199_v50 = vpack.c.bf16 %v171_v48, %v171_v48  ;;  %v163_v51 = vmul.f32 %v195_v42, %v154_v49 }
 0x195   :  { %182 = vst.msk [vmem:[%s309_s6] sm:$0xf] %vm181_vm3, %v199_v50  ;;  %v172_v52 = vadd.f32 %v196_v44, %v163_v51 }
 0x197   :  { %v200_v53 = vpack.c.bf16 %v172_v52, %v172_v52 }
 0x199   :  { %183 = vst.msk [vmem:[%s309_s6 + $0x4] sm:$0xf] %vm181_vm3, %v200_v53 }

// kernel: fwd.73
= control target key start
LH: loop header
LB: loop body
LE: loop exit
PB: predicated region body
PF: predicated region fallthrough
CT: control target
= control target key end

     0   :  { %9 = vsyncpa [#allocation3], 0  ;;  %vm26_vm0 = vcmask 257024   ;;  %s291_s0 = inlined_call_operand.vmem [shape: f32[2,32], index: 0, kind: input, shape index: {}]   ;;  %s292_s1 = inlined_call_operand.vmem [shape: f32[4,32], index: 1, kind: input, shape index: {}]   ;;  %s293_s2 = inlined_call_operand.hbm [shape: f32[2,4], index: 2, kind: output, shape index: {0}]   ;;  %s294_s3 = inlined_call_operand.hbm [shape: f32[1,1], index: 3, kind: output, shape index: {1}]  }
   0x1   :  { %v24_v0 = vld [vmem:[%s292_s1] sm:$0xf] }
   0x2   :  { %v15_v1 = vld [vmem:[%s291_s0] sm:$0x3]  ;;  %v25_v2 = vmul.f32 %v24_v0, %v24_v0 }
   0x3   :  { %v16_v3 = vmul.f32 %v15_v1, %v15_v1 }
   0x4   :  { %10 = vsyncpa [#allocation4], 0  ;;  %vm17_vm1 = vcmask 254976   ;;  %v27_v4 = vsel %vm26_vm0, %v25_v2, 0.0  ;;  %v237_v6 = vmov 0.0   ;;  %vm238_vm2 = vmmov 0  }
   0x5   :  { %28 = vadd.xlane.f32.xlu0 %v27_v4  ;;  %v18_v5 = vsel %vm17_vm1, %v16_v3, 0.0  ;;  %182 = vmatprep.subr.mxu0 %v237_v6  ;;  %vm33_vm3 = vcmask 261120   ;;  %vm110_vm4 = vcmask 25600   ;;  %v125_v24 = vlaneseq  ;;  %s239_s0 = smov [#allocation2]  }
   0x6   :  { %184 = vmatprep.mubr.msk.f32.mxu0 %vm238_vm2, %v237_v6  ;;  %vm133_vm6 = vcmask 9216   ;;  %s156_s1 = sshll.u32 %s239_s0, 4  ;;  %s157_s1 = int_to_ptr.vmem [resolvable:$true] %s156_s1 }
   0x7   :  { %v126_v25 = vshrl.u32 %v125_v24, 7  ;;  %v128_v26 = vand.u32 127, %v125_v24  ;;  %s201_s16 = scalar_lea.vmem %s157_s1, 32  ;;  %p206_p1 = scmp.lt.s32.totalorder %s157_s1, %s157_s1 }
   0x8   :  { %p202_p0 = scmp.ne.s32.totalorder %s157_s1, %s201_s16  ;;  %p207_p2 = scmp.lt.s32.totalorder %s201_s16, %s201_s16 }
   0x9   :  { %19 = vadd.xlane.f32.xlu0 %v18_v5  ;;  %vm129_vm5 = vcmp.eq.s32.totalorder %v126_v25, %v128_v26 }
   0xa   :  { %v179_v30 = vsel %vm129_vm5, 1.0, %v237_v6  ;;  %p208_p3 = por %p207_p2, %p206_p1 }
   0xc   :  { %p209_p4 = pnand %p208_p3, %p202_p0 }
  0x92   :  { %v29_v7 = vpop.xlane.xlu0 %28 }
  0x93   :  { %v30_v8 = vmax.f32 %v29_v7, 1e-24 }
  0x95   :  { %193 = vrsqrt.f32 %v30_v8 }
  0x96   :  { %v20_v9 = vpop.xlane.xlu0 %19 }
  0x97   :  { %v21_v10 = vmax.f32 %v20_v9, 1e-24 }
  0x99   :  { %195 = vrsqrt.f32 %v21_v10 }
  0x9f   :  { %v194_v11 = vpop.eup %193 }
  0xa0   :  { %v32_v12 = vmul.f32 %v194_v11, %v24_v0 }
  0xa2   :  { %183 = vmatpush3.xpose.msk.msra.mxu0 %vm33_vm3, %v32_v12 }
  0xa3   :  { %v196_v13 = vpop.eup %195 }
  0xa4   :  { %v23_v14 = vmul.f32 %v196_v13, %v15_v1 }
  0xa6   :  { %185 = vmatmul.mubr.msk.f32.vlgmr.msra.gmra.mrb[0].mxu0 %vm33_vm3, %v23_v14 }
 0x179   :  { %v106_v15 = vpop.f32.mrb[0].mxu0 }
 0x17a   :  { %v186_v16 = vpop.f32.mrb[1].mxu0  ;;  %v112_v17 = vsel %vm110_vm4, %v106_v15, -inf  ;;  %111 = vst.msk [vmem:[#allocation2] sm:$0x3] %vm110_vm4, %v106_v15 }
 0x17b   :  { %113 = vmax.xlane.f32.xlu1 %v112_v17 }
 0x208   :  { %v114_v18 = vpop.xlane.xlu1 %113 }
 0x209   :  { %v115_v19 = vsub.f32 %v106_v15, %v114_v18 }
 0x20b   :  { %v116_v20 = vmul.f32 1.442695, %v115_v19 }
 0x20d   :  { %197 = vpow2.f32 %v116_v20 }
 0x217   :  { %v198_v21 = vpop.eup %197 }
 0x218   :  { %v118_v22 = vsel %vm110_vm4, %v198_v21, 0.0 }
 0x219   :  { %119 = vadd.xlane.f32.xlu1 %v118_v22 }
 0x2a6   :  { %v120_v23 = vpop.xlane.xlu1 %119 }
 0x2a7   :  { %199 = vlog2.f32 %v120_v23 }
 0x2b1   :  { %v200_v27 = vpop.eup %199 }
 0x2b2   :  { %v122_v28 = vmul.f32 0.6931472, %v200_v27 }
 0x2b4   :  { %v123_v29 = vadd.f32 %v122_v28, %v114_v18 }
 0x2b6   :  { %v124_v31 = vsub.f32 %v106_v15, %v123_v29 }
 0x2b8   :  { %v132_v32 = vmul.f32 %v179_v30, %v124_v31 }
 0x2ba   :  { %v134_v33 = vsel %vm133_vm6, %v132_v32, 0.0 }
 0x2bb   :  { %135 = vadd.xlane.f32.xlu0 %v134_v33 }
 0x2bc   :  { %212 = shalt.err (!%p209_p4)
}
 0x2bd   :  { %s213_s19 = scalar_lea.hbm %s293_s2, 32 }
 0x2be   :  { %p214_p5 = scmp.ne.s32.totalorder %s293_s2, %s213_s19  ;;  %p217_p6 = scmp.lt.u32.totalorder %s213_s19, %s293_s2 }
 0x2c0   :  { %p219_p7 = pnand %p217_p6, %p214_p5 }
 0x2c2   :  { %222 = shalt.err (!%p219_p7)
}
 0x2c3   :  { %159 = dma.vmem_to_hbm [thread:$0]  %s157_s1, 32, %s293_s2, [#allocation3]  }
 0x2c4   :  { %s223_s4 = scalar_lea.hbm %s294_s3, 16 }
 0x2c5   :  { %p224_p8 = scmp.ne.s32.totalorder %s294_s3, %s223_s4  ;;  %p227_p9 = scmp.lt.u32.totalorder %s223_s4, %s294_s3 }
 0x2c7   :  { %p229_p10 = pnand %p227_p9, %p224_p8 }
 0x348   :  { %v136_v34 = vpop.xlane.xlu0 %135 }
 0x349   :  { %v137_v35 = vrot.slane %v136_v34, 4 }
 0x34b   :  { %v138_v36 = vadd.f32 %v137_v35, %v136_v34 }
 0x34d   :  { %v139_v37 = vrot.slane %v138_v36, 2 }
 0x34f   :  { %v140_v38 = vadd.f32 %v139_v37, %v138_v36 }
 0x351   :  { %v141_v39 = vrot.slane %v140_v38, 1 }
 0x353   :  { %v142_v40 = vadd.f32 %v141_v39, %v140_v38 }
 0x355   :  { %187 = vpush %v142_v40 }
 0x386   :  { %s188_s26 = spop %187 }
 0x387   :  { %s144_s27 = ssub.f32 0.0, %s188_s26 }
 0x389   :  { %s147_s28 = smul.f32 0.5, %s144_s27 }
 0x38b   :  { %149 = sst [smem:[#allocation5]] %s147_s28 }
 0x38c   :  { %232 = shalt.err (!%p229_p10)
}
 0x38d   :  { %s240_s8 = smov [#allocation5]  }
 0x38e   :  { %167 = dma.smem_to_hbm %s240_s8, 16, %s294_s3, [#allocation4]  }
 0x38f   :  { %233 = dma.done.wait [#allocation3], 32  }
 0x390   :  { %234 = vsyncadd [#allocation3], 4294967264 }
 0x391   :  { %235 = dma.done.wait [#allocation4], 16  }
 0x392   :  { %236 = vsyncadd [#allocation4], 4294967280 }
 0x393   :  { %174 = sfence }
 0x394   :  { %175 = vsyncpa [#allocation3], 1 }
 0x395   :  { %176 = vsyncpa [#allocation4], 1 }

</bundles_post_ra>
